<compile_context>
chip_gen: v7x
topology: tpu7x:2x2x1
jax: 0.10.0
libtpu: 0.0.40
codegen_flags: <defaults>
</compile_context>

<pallas_src>
import functools

import jax
import jax.numpy as jnp
from jax.experimental import pallas as pl
from jax.experimental.pallas import tpu as pltpu

EXPANSION = 4


def _pad_to(n, m):
    return ((n + m - 1) // m) * m


# --------------------------- fused matmul kernel -----------------------------


def _make_mm_kernel(prologue, residual):
    """Matmul kernel with optional BN-affine+ReLU prologue and residual epilogue."""

    def kernel(*refs):
        acc_ref = refs[-1]
        o_ref = refs[-2]
        a_ref, b_ref = refs[0], refs[1]
        idx = 2
        if prologue:
            s_ref, t_ref = refs[idx], refs[idx + 1]
            idx += 2
        if residual:
            r_ref = refs[idx]

        @pl.when(pl.program_id(2) == 0)
        def _():
            acc_ref[...] = jnp.zeros_like(acc_ref)

        a = a_ref[...]
        if prologue:  # fused BatchNorm affine + ReLU on the current K slab
            a = jnp.maximum(a * s_ref[...] + t_ref[...], 0.0)
        acc_ref[...] += jnp.dot(a.astype(jnp.bfloat16), b_ref[...],
                                preferred_element_type=jnp.float32)

        @pl.when(pl.program_id(2) == pl.num_programs(2) - 1)
        def _():
            out = acc_ref[...]
            if residual:
                out = out + r_ref[...]
            o_ref[...] = out

    return kernel


def fused_matmul(a, w_padded, n_out, scale=None, shift=None, residual=None):
    """Computes relu(a*scale + shift) @ w (+ residual).

    a:        (M, K)  f32 activations (unpadded).
    w_padded: (Kp, Np) bf16 weights, pre-padded at init time.
    scale/shift: optional (K,) per-K affine (BN fused prologue).
    residual: optional (M, n_out) f32 added in the epilogue.
    """
    M, K = a.shape
    Kp, Np = w_padded.shape
    tm = min(_pad_to(M, 16), 256)
    Mp = _pad_to(M, tm)
    # Kp / Np were padded so that min(dim, 512) always divides them.
    tk = min(Kp, 512)
    tn = min(Np, 512)

    a_p = a.astype(jnp.float32)
    if (Mp, Kp) != (M, K):
        a_p = jnp.pad(a_p, ((0, Mp - M), (0, Kp - K)))

    prologue = scale is not None
    has_res = residual is not None

    inputs = [a_p, w_padded]
    in_specs = [pl.BlockSpec((tm, tk), lambda i, j, k: (i, k)),
                pl.BlockSpec((tk, tn), lambda i, j, k: (k, j))]
    if prologue:
        s_p = jnp.zeros((1, Kp), jnp.float32).at[0, :K].set(scale.astype(jnp.float32))
        t_p = jnp.zeros((1, Kp), jnp.float32).at[0, :K].set(shift.astype(jnp.float32))
        inputs += [s_p, t_p]
        in_specs += [pl.BlockSpec((1, tk), lambda i, j, k: (0, k)),
                     pl.BlockSpec((1, tk), lambda i, j, k: (0, k))]
    if has_res:
        r_p = residual.astype(jnp.float32)
        if r_p.shape != (Mp, Np):
            r_p = jnp.pad(r_p, ((0, Mp - r_p.shape[0]), (0, Np - r_p.shape[1])))
        inputs.append(r_p)
        in_specs.append(pl.BlockSpec((tm, tn), lambda i, j, k: (i, j)))

    out = pl.pallas_call(
        _make_mm_kernel(prologue, has_res),
        out_shape=jax.ShapeDtypeStruct((Mp, Np), jnp.float32),
        grid_spec=pltpu.PrefetchScalarGridSpec(
            num_scalar_prefetch=0,
            grid=(Mp // tm, Np // tn, Kp // tk),
            in_specs=in_specs,
            out_specs=pl.BlockSpec((tm, tn), lambda i, j, k: (i, j)),
            scratch_shapes=[pltpu.VMEM((tm, tn), jnp.float32)]),
        compiler_params=pltpu.CompilerParams(
            dimension_semantics=("parallel", "parallel", "arbitrary")),
    )(*inputs)
    return out[:M, :n_out]


# ------------------------ lane-dense affine + ReLU ---------------------------


def _affine_relu_kernel(x_ref, s_ref, t_ref, o_ref):
    o_ref[...] = jnp.maximum(x_ref[...] * s_ref[...] + t_ref[...], 0.0)


def affine_relu(x2d, scale, shift):
    """Per-channel y = relu(x*scale + shift). Used only where prologue fusion
    would be incorrect (conv2: spatial zero-pad happens after the activation)."""
    R, C = x2d.shape
    Cp = _pad_to(C, 128)
    tr = min(_pad_to(R, 8), 512)
    Rp = _pad_to(R, tr)
    x_p = x2d.astype(jnp.float32)
    if (Rp, Cp) != (R, C):
        x_p = jnp.pad(x_p, ((0, Rp - R), (0, Cp - C)))
    s_p = jnp.zeros((1, Cp), jnp.float32).at[0, :C].set(scale.astype(jnp.float32))
    t_p = jnp.zeros((1, Cp), jnp.float32).at[0, :C].set(shift.astype(jnp.float32))
    out = pl.pallas_call(
        _affine_relu_kernel,
        out_shape=jax.ShapeDtypeStruct((Rp, Cp), jnp.float32),
        grid_spec=pltpu.PrefetchScalarGridSpec(
            num_scalar_prefetch=0,
            grid=(Rp // tr,),
            in_specs=[pl.BlockSpec((tr, Cp), lambda i: (i, 0)),
                      pl.BlockSpec((1, Cp), lambda i: (0, 0)),
                      pl.BlockSpec((1, Cp), lambda i: (0, 0))],
            out_specs=pl.BlockSpec((tr, Cp), lambda i: (i, 0))),
        compiler_params=pltpu.CompilerParams(dimension_semantics=("parallel",)),
    )(x_p, s_p, t_p)
    return out[:R, :C]


# ------------------------------ plain-JAX glue --------------------------------


def bn_scale_shift(x_nhwc, gamma, beta, eps=1e-5):
    """Training-mode BatchNorm (batch statistics, biased variance) -> per-channel
    scale/shift to be fused into a matmul prologue / affine kernel."""
    # TODO(synk): running-stats (eval-mode) BN is not modeled; this matches the
    # reference module's default training-mode forward.
    c = x_nhwc.shape[-1]
    x2 = x_nhwc.reshape(-1, c).astype(jnp.float32)
    mean = jnp.mean(x2, axis=0)
    var = jnp.mean(jnp.square(x2 - mean), axis=0)
    scale = gamma * jax.lax.rsqrt(var + eps)
    shift = beta - mean * scale
    return scale, shift


def im2col(x, kh, kw, stride, pad):
    """x: (B,H,W,C) -> (B*Ho*Wo, kh*kw*C) patches, plus (Ho, Wo)."""
    B, H, W, C = x.shape
    xp = jnp.pad(x, ((0, 0), (pad, pad), (pad, pad), (0, 0)))
    Ho = (H + 2 * pad - kh) // stride + 1
    Wo = (W + 2 * pad - kw) // stride + 1
    cols = [xp[:, i:i + Ho * stride:stride, j:j + Wo * stride:stride, :]
            for i in range(kh) for j in range(kw)]
    patches = jnp.concatenate(cols, axis=-1)
    return patches.reshape(B * Ho * Wo, kh * kw * C), Ho, Wo


# ------------------------------ block forward --------------------------------


def preact_bottleneck(x_nhwc, p, stride, planes):
    B, H, W, cin = x_nhwc.shape
    cout = EXPANSION * planes

    # bn1 statistics (shared by conv1 and the shortcut conv prologues)
    s1, t1 = bn_scale_shift(x_nhwc, p['bn1_g'], p['bn1_b'])
    x2d = x_nhwc.reshape(-1, cin)

    if 'sc_w' in p:
        # shortcut = 1x1 conv with stride on relu(bn1(x)); affine fused in prologue
        x_sub = x_nhwc[:, ::stride, ::stride, :]
        shortcut2d = fused_matmul(x_sub.reshape(-1, cin), p['sc_w'], cout, s1, t1)
    else:
        shortcut2d = x2d  # identity shortcut (stride==1 and cin==cout)

    # conv1: 1x1, bn1+relu fused as prologue
    out1 = fused_matmul(x2d, p['c1_w'], planes, s1, t1).reshape(B, H, W, planes)

    # conv2: 3x3 stride/pad=1. The reference zero-pads AFTER relu(bn2(.)), so the
    # activation is applied by a standalone lane-dense kernel before im2col.
    s2, t2 = bn_scale_shift(out1, p['bn2_g'], p['bn2_b'])
    act1 = affine_relu(out1.reshape(-1, planes), s2, t2).reshape(B, H, W, planes)
    patches, Ho, Wo = im2col(act1, 3, 3, stride, 1)
    out2 = fused_matmul(patches, p['c2_w'], planes).reshape(B, Ho, Wo, planes)

    # conv3: 1x1, bn3+relu fused as prologue, residual add fused in epilogue
    s3, t3 = bn_scale_shift(out2, p['bn3_g'], p['bn3_b'])
    out3 = fused_matmul(out2.reshape(-1, planes), p['c3_w'], cout, s3, t3,
                        residual=shortcut2d)
    return out3.reshape(B, Ho, Wo, cout)


def forward(params, x_nchw, stride, planes):
    x = jnp.transpose(x_nchw, (0, 2, 3, 1)).astype(jnp.float32)  # NCHW -> NHWC
    y = preact_bottleneck(x, params, stride, planes)
    return jnp.transpose(y, (0, 3, 1, 2))                        # NHWC -> NCHW


# ----------------------------- parameter init --------------------------------


def conv_hwio(key, kh, kw, cin, cout):
    fan_out = cout * kh * kw
    std = (2.0 / fan_out) ** 0.5
    return std * jax.random.normal(key, (kh, kw, cin, cout), jnp.float32)


def pack_conv_weight(w_hwio):
    """Reshape (kh,kw,Cin,Cout) -> (K,N), zero-pad to tile-aligned (Kp,Np), bf16.
    Done once at init so the matmul hot path never pads/transposes weights."""
    kh, kw, cin, cout = w_hwio.shape
    w2 = w_hwio.reshape(kh * kw * cin, cout)
    K, N = w2.shape
    tk = min(_pad_to(K, 128), 512)
    tn = min(_pad_to(N, 128), 512)
    Kp, Np = _pad_to(K, tk), _pad_to(N, tn)
    return jnp.zeros((Kp, Np), jnp.bfloat16).at[:K, :N].set(w2.astype(jnp.bfloat16))


def init_params(key, in_planes, planes, stride):
    k1, k2, k3, k4 = jax.random.split(key, 4)
    p = {
        'bn1_g': jnp.ones((in_planes,), jnp.float32),
        'bn1_b': jnp.zeros((in_planes,), jnp.float32),
        'c1_w': pack_conv_weight(conv_hwio(k1, 1, 1, in_planes, planes)),
        'bn2_g': jnp.ones((planes,), jnp.float32),
        'bn2_b': jnp.zeros((planes,), jnp.float32),
        'c2_w': pack_conv_weight(conv_hwio(k2, 3, 3, planes, planes)),
        'bn3_g': jnp.ones((planes,), jnp.float32),
        'bn3_b': jnp.zeros((planes,), jnp.float32),
        'c3_w': pack_conv_weight(conv_hwio(k3, 1, 1, planes, EXPANSION * planes)),
    }
    if stride != 1 or in_planes != EXPANSION * planes:
        p['sc_w'] = pack_conv_weight(conv_hwio(k4, 1, 1, in_planes,
                                               EXPANSION * planes))
    return p


# ---------------------------------- main --------------------------------------

if __name__ == "__main__":
    key = jax.random.PRNGKey(0)
    pkey, xkey = jax.random.split(key)

    B, in_planes, planes, stride = 2, 32, 16, 2
    H = W = 16
    params = init_params(pkey, in_planes, planes, stride)
    x = jax.random.normal(xkey, (B, in_planes, H, W), jnp.float32)   # NCHW input

    fwd = jax.jit(functools.partial(forward, stride=stride, planes=planes))
    out = jax.block_until_ready(fwd(params, x))

    Ho = (H - 1) // stride + 1
    Wo = (W - 1) // stride + 1
    assert out.shape == (B, EXPANSION * planes, Ho, Wo), out.shape
    assert bool(jnp.all(jnp.isfinite(out)))
    print("KERNEL_OK")
</pallas_src>

<mosaic_0001>
module attributes {stable_mosaic.version = 11 : i64} {
  func.func @_affine_relu_kernel(%arg0: i32, %arg1: memref<512x128xf32, #tpu.memory_space<vmem>>, %arg2: memref<1x128xf32, #tpu.memory_space<vmem>>, %arg3: memref<1x128xf32, #tpu.memory_space<vmem>>, %arg4: memref<512x128xf32, #tpu.memory_space<vmem>>) attributes {dimension_semantics = [#tpu.dimension_semantics<parallel>], iteration_bounds = array<i64: 1>, scalar_prefetch = 0 : i64, scratch_operands = 0 : i64, tpu.core_type = #tpu.core_type<tc>, window_params = [{transform_indices = @transform_0, window_bounds = array<i64: 512, 128>}, {pipeline_mode = #tpu.pipeline_mode<synchronous>, transform_indices = @transform_1, window_bounds = array<i64: 1, 128>}, {pipeline_mode = #tpu.pipeline_mode<synchronous>, transform_indices = @transform_2, window_bounds = array<i64: 1, 128>}, {transform_indices = @transform_3, window_bounds = array<i64: 512, 128>}]} {
    %c0 = arith.constant 0 : index
    %c0_0 = arith.constant 0 : index
    %0 = vector.load %arg1[%c0, %c0_0] : memref<512x128xf32, #tpu.memory_space<vmem>>, vector<512x128xf32>
    %c0_1 = arith.constant 0 : index
    %c0_2 = arith.constant 0 : index
    %1 = vector.load %arg2[%c0_1, %c0_2] : memref<1x128xf32, #tpu.memory_space<vmem>>, vector<1x128xf32>
    %2 = vector.broadcast %1 : vector<1x128xf32> to vector<512x128xf32>
    %3 = arith.mulf %0, %2 : vector<512x128xf32>
    %c0_3 = arith.constant 0 : index
    %c0_4 = arith.constant 0 : index
    %4 = vector.load %arg3[%c0_3, %c0_4] : memref<1x128xf32, #tpu.memory_space<vmem>>, vector<1x128xf32>
    %5 = vector.broadcast %4 : vector<1x128xf32> to vector<512x128xf32>
    %6 = arith.addf %3, %5 : vector<512x128xf32>
    %cst = arith.constant 0.000000e+00 : f32
    %7 = vector.broadcast %cst : f32 to vector<512x128xf32>
    %8 = arith.maximumf %6, %7 : vector<512x128xf32>
    %c0_5 = arith.constant 0 : index
    %c0_6 = arith.constant 0 : index
    %9 = vector.load %arg4[%c0_5, %c0_6] : memref<512x128xf32, #tpu.memory_space<vmem>>, vector<512x128xf32>
    tpu.vector_store %arg4[%c0_5, %c0_6], %8 {strides = array<i32>} : memref<512x128xf32, #tpu.memory_space<vmem>>, vector<512x128xf32>,
    return
  }
  func.func @transform_0(%arg0: i32) -> (i32, i32) {
    %c0_i32 = arith.constant 0 : i32
    %c0_i32_0 = arith.constant 0 : i32
    return %arg0, %c0_i32 : i32, i32
  }
  func.func @transform_1(%arg0: i32) -> (i32, i32) {
    %c0_i32 = arith.constant 0 : i32
    %c0_i32_0 = arith.constant 0 : i32
    %c0_i32_1 = arith.constant 0 : i32
    return %c0_i32, %c0_i32_0 : i32, i32
  }
  func.func @transform_2(%arg0: i32) -> (i32, i32) {
    %c0_i32 = arith.constant 0 : i32
    %c0_i32_0 = arith.constant 0 : i32
    %c0_i32_1 = arith.constant 0 : i32
    return %c0_i32, %c0_i32_0 : i32, i32
  }
  func.func @transform_3(%arg0: i32) -> (i32, i32) {
    %c0_i32 = arith.constant 0 : i32
    %c0_i32_0 = arith.constant 0 : i32
    return %arg0, %c0_i32 : i32, i32
  }
}

module attributes {stable_mosaic.version = 11 : i64} {
  func.func @kernel(%arg0: i32, %arg1: i32, %arg2: i32, %arg3: memref<256x128xf32, #tpu.memory_space<vmem>>, %arg4: memref<128x128xbf16, #tpu.memory_space<vmem>>, %arg5: memref<1x128xf32, #tpu.memory_space<vmem>>, %arg6: memref<1x128xf32, #tpu.memory_space<vmem>>, %arg7: memref<256x128xf32, #tpu.memory_space<vmem>>, %arg8: memref<256x128xf32, #tpu.memory_space<vmem>>) attributes {dimension_semantics = [#tpu.dimension_semantics<parallel>, #tpu.dimension_semantics<parallel>, #tpu.dimension_semantics<arbitrary>], iteration_bounds = array<i64: 2, 1, 1>, scalar_prefetch = 0 : i64, scratch_operands = 1 : i64, tpu.core_type = #tpu.core_type<tc>, window_params = [{transform_indices = @transform_0, window_bounds = array<i64: 256, 128>}, {transform_indices = @transform_1, window_bounds = array<i64: 128, 128>}, {transform_indices = @transform_2, window_bounds = array<i64: 1, 128>}, {transform_indices = @transform_3, window_bounds = array<i64: 1, 128>}, {transform_indices = @transform_4, window_bounds = array<i64: 256, 128>}]} {
    %c0_i32 = arith.constant 0 : i32
    %0 = arith.cmpi eq, %arg2, %c0_i32 : i32
    %1 = arith.extui %0 : i1 to i32
    %c0_i32_0 = arith.constant 0 : i32
    %2 = arith.cmpi ne, %1, %c0_i32_0 : i32
    scf.if %2 {
      %cst_15 = arith.constant 0.000000e+00 : f32
      %21 = vector.broadcast %cst_15 : f32 to vector<256x128xf32>
      %c0_16 = arith.constant 0 : index
      %c0_17 = arith.constant 0 : index
      %22 = vector.load %arg8[%c0_16, %c0_17] : memref<256x128xf32, #tpu.memory_space<vmem>>, vector<256x128xf32>
      tpu.vector_store %arg8[%c0_16, %c0_17], %21 {strides = array<i32>} : memref<256x128xf32, #tpu.memory_space<vmem>>, vector<256x128xf32>,
    } else {
    }
    %c0 = arith.constant 0 : index
    %c0_1 = arith.constant 0 : index
    %3 = vector.load %arg3[%c0, %c0_1] : memref<256x128xf32, #tpu.memory_space<vmem>>, vector<256x128xf32>
    %c0_2 = arith.constant 0 : index
    %c0_3 = arith.constant 0 : index
    %4 = vector.load %arg5[%c0_2, %c0_3] : memref<1x128xf32, #tpu.memory_space<vmem>>, vector<1x128xf32>
    %5 = vector.broadcast %4 : vector<1x128xf32> to vector<256x128xf32>
    %6 = arith.mulf %3, %5 : vector<256x128xf32>
    %c0_4 = arith.constant 0 : index
    %c0_5 = arith.constant 0 : index
    %7 = vector.load %arg6[%c0_4, %c0_5] : memref<1x128xf32, #tpu.memory_space<vmem>>, vector<1x128xf32>
    %8 = vector.broadcast %7 : vector<1x128xf32> to vector<256x128xf32>
    %9 = arith.addf %6, %8 : vector<256x128xf32>
    %cst = arith.constant 0.000000e+00 : f32
    %10 = vector.broadcast %cst : f32 to vector<256x128xf32>
    %11 = arith.maximumf %9, %10 : vector<256x128xf32>
    %c0_6 = arith.constant 0 : index
    %c0_7 = arith.constant 0 : index
    %12 = vector.load %arg8[%c0_6, %c0_7] : memref<256x128xf32, #tpu.memory_space<vmem>>, vector<256x128xf32>
    %13 = arith.truncf %11 : vector<256x128xf32> to vector<256x128xbf16>
    %c0_8 = arith.constant 0 : index
    %c0_9 = arith.constant 0 : index
    %14 = vector.load %arg4[%c0_8, %c0_9] : memref<128x128xbf16, #tpu.memory_space<vmem>>, vector<128x128xbf16>
    %cst_10 = arith.constant dense<0.000000e+00> : vector<256x128xf32>
    %15 = tpu.matmul %13, %14, %cst_10 {dimension_numbers = #tpu.dot_dimension_numbers<[1], [0], [0], [1], [0, 0, 1, 1], [], []>} : vector<256x128xbf16>, vector<128x128xbf16>, vector<256x128xf32> -> vector<256x128xf32>
    %16 = arith.addf %12, %15 : vector<256x128xf32>
    %c0_11 = arith.constant 0 : index
    %c0_12 = arith.constant 0 : index
    %17 = vector.load %arg8[%c0_11, %c0_12] : memref<256x128xf32, #tpu.memory_space<vmem>>, vector<256x128xf32>
    tpu.vector_store %arg8[%c0_11, %c0_12], %16 {strides = array<i32>} : memref<256x128xf32, #tpu.memory_space<vmem>>, vector<256x128xf32>,
    %c0_i32_13 = arith.constant 0 : i32
    %18 = arith.cmpi eq, %arg2, %c0_i32_13 : i32
    %19 = arith.extui %18 : i1 to i32
    %c0_i32_14 = arith.constant 0 : i32
    %20 = arith.cmpi ne, %19, %c0_i32_14 : i32
    scf.if %20 {
      %c0_15 = arith.constant 0 : index
      %c0_16 = arith.constant 0 : index
      %21 = vector.load %arg8[%c0_15, %c0_16] : memref<256x128xf32, #tpu.memory_space<vmem>>, vector<256x128xf32>
      %c0_17 = arith.constant 0 : index
      %c0_18 = arith.constant 0 : index
      %22 = vector.load %arg7[%c0_17, %c0_18] : memref<256x128xf32, #tpu.memory_space<vmem>>, vector<256x128xf32>
      tpu.vector_store %arg7[%c0_17, %c0_18], %21 {strides = array<i32>} : memref<256x128xf32, #tpu.memory_space<vmem>>, vector<256x128xf32>,
    } else {
    }
    return
  }
  func.func @transform_0(%arg0: i32, %arg1: i32, %arg2: i32) -> (i32, i32) {
    %c0_i32 = arith.constant 0 : i32
    return %arg0, %arg2 : i32, i32
  }
  func.func @transform_1(%arg0: i32, %arg1: i32, %arg2: i32) -> (i32, i32) {
    %c0_i32 = arith.constant 0 : i32
    return %arg2, %arg1 : i32, i32
  }
  func.func @transform_2(%arg0: i32, %arg1: i32, %arg2: i32) -> (i32, i32) {
    %c0_i32 = arith.constant 0 : i32
    %c0_i32_0 = arith.constant 0 : i32
    return %c0_i32, %arg2 : i32, i32
  }
  func.func @transform_3(%arg0: i32, %arg1: i32, %arg2: i32) -> (i32, i32) {
    %c0_i32 = arith.constant 0 : i32
    %c0_i32_0 = arith.constant 0 : i32
    return %c0_i32, %arg2 : i32, i32
  }
  func.func @transform_4(%arg0: i32, %arg1: i32, %arg2: i32) -> (i32, i32) {
    %c0_i32 = arith.constant 0 : i32
    return %arg0, %arg1 : i32, i32
  }
}

module attributes {stable_mosaic.version = 11 : i64} {
  func.func @kernel(%arg0: i32, %arg1: i32, %arg2: i32, %arg3: memref<128x256xf32, #tpu.memory_space<vmem>>, %arg4: memref<256x128xbf16, #tpu.memory_space<vmem>>, %arg5: memref<128x128xf32, #tpu.memory_space<vmem>>, %arg6: memref<128x128xf32, #tpu.memory_space<vmem>>) attributes {dimension_semantics = [#tpu.dimension_semantics<parallel>, #tpu.dimension_semantics<parallel>, #tpu.dimension_semantics<arbitrary>], iteration_bounds = array<i64: 1, 1, 1>, scalar_prefetch = 0 : i64, scratch_operands = 1 : i64, tpu.core_type = #tpu.core_type<tc>, window_params = [{transform_indices = @transform_0, window_bounds = array<i64: 128, 256>}, {transform_indices = @transform_1, window_bounds = array<i64: 256, 128>}, {transform_indices = @transform_2, window_bounds = array<i64: 128, 128>}]} {
    %c0_i32 = arith.constant 0 : i32
    %0 = arith.cmpi eq, %arg2, %c0_i32 : i32
    %1 = arith.extui %0 : i1 to i32
    %c0_i32_0 = arith.constant 0 : i32
    %2 = arith.cmpi ne, %1, %c0_i32_0 : i32
    scf.if %2 {
      %cst_10 = arith.constant 0.000000e+00 : f32
      %13 = vector.broadcast %cst_10 : f32 to vector<128x128xf32>
      %c0_11 = arith.constant 0 : index
      %c0_12 = arith.constant 0 : index
      %14 = vector.load %arg6[%c0_11, %c0_12] : memref<128x128xf32, #tpu.memory_space<vmem>>, vector<128x128xf32>
      tpu.vector_store %arg6[%c0_11, %c0_12], %13 {strides = array<i32>} : memref<128x128xf32, #tpu.memory_space<vmem>>, vector<128x128xf32>,
    } else {
    }
    %c0 = arith.constant 0 : index
    %c0_1 = arith.constant 0 : index
    %3 = vector.load %arg3[%c0, %c0_1] : memref<128x256xf32, #tpu.memory_space<vmem>>, vector<128x256xf32>
    %c0_2 = arith.constant 0 : index
    %c0_3 = arith.constant 0 : index
    %4 = vector.load %arg6[%c0_2, %c0_3] : memref<128x128xf32, #tpu.memory_space<vmem>>, vector<128x128xf32>
    %5 = arith.truncf %3 : vector<128x256xf32> to vector<128x256xbf16>
    %c0_4 = arith.constant 0 : index
    %c0_5 = arith.constant 0 : index
    %6 = vector.load %arg4[%c0_4, %c0_5] : memref<256x128xbf16, #tpu.memory_space<vmem>>, vector<256x128xbf16>
    %cst = arith.constant dense<0.000000e+00> : vector<128x128xf32>
    %7 = tpu.matmul %5, %6, %cst {dimension_numbers = #tpu.dot_dimension_numbers<[1], [0], [0], [1], [0, 0, 1, 1], [], []>} : vector<128x256xbf16>, vector<256x128xbf16>, vector<128x128xf32> -> vector<128x128xf32>
    %8 = arith.addf %4, %7 : vector<128x128xf32>
    %c0_6 = arith.constant 0 : index
    %c0_7 = arith.constant 0 : index
    %9 = vector.load %arg6[%c0_6, %c0_7] : memref<128x128xf32, #tpu.memory_space<vmem>>, vector<128x128xf32>
    tpu.vector_store %arg6[%c0_6, %c0_7], %8 {strides = array<i32>} : memref<128x128xf32, #tpu.memory_space<vmem>>, vector<128x128xf32>,
    %c0_i32_8 = arith.constant 0 : i32
    %10 = arith.cmpi eq, %arg2, %c0_i32_8 : i32
    %11 = arith.extui %10 : i1 to i32
    %c0_i32_9 = arith.constant 0 : i32
    %12 = arith.cmpi ne, %11, %c0_i32_9 : i32
    scf.if %12 {
      %c0_10 = arith.constant 0 : index
      %c0_11 = arith.constant 0 : index
      %13 = vector.load %arg6[%c0_10, %c0_11] : memref<128x128xf32, #tpu.memory_space<vmem>>, vector<128x128xf32>
      %c0_12 = arith.constant 0 : index
      %c0_13 = arith.constant 0 : index
      %14 = vector.load %arg5[%c0_12, %c0_13] : memref<128x128xf32, #tpu.memory_space<vmem>>, vector<128x128xf32>
      tpu.vector_store %arg5[%c0_12, %c0_13], %13 {strides = array<i32>} : memref<128x128xf32, #tpu.memory_space<vmem>>, vector<128x128xf32>,
    } else {
    }
    return
  }
  func.func @transform_0(%arg0: i32, %arg1: i32, %arg2: i32) -> (i32, i32) {
    %c0_i32 = arith.constant 0 : i32
    return %arg0, %arg2 : i32, i32
  }
  func.func @transform_1(%arg0: i32, %arg1: i32, %arg2: i32) -> (i32, i32) {
    %c0_i32 = arith.constant 0 : i32
    return %arg2, %arg1 : i32, i32
  }
  func.func @transform_2(%arg0: i32, %arg1: i32, %arg2: i32) -> (i32, i32) {
    %c0_i32 = arith.constant 0 : i32
    return %arg0, %arg1 : i32, i32
  }
}

module attributes {stable_mosaic.version = 11 : i64} {
  func.func @kernel(%arg0: i32, %arg1: i32, %arg2: i32, %arg3: memref<128x128xf32, #tpu.memory_space<vmem>>, %arg4: memref<128x128xbf16, #tpu.memory_space<vmem>>, %arg5: memref<1x128xf32, #tpu.memory_space<vmem>>, %arg6: memref<1x128xf32, #tpu.memory_space<vmem>>, %arg7: memref<128x128xf32, #tpu.memory_space<vmem>>, %arg8: memref<128x128xf32, #tpu.memory_space<vmem>>, %arg9: memref<128x128xf32, #tpu.memory_space<vmem>>) attributes {dimension_semantics = [#tpu.dimension_semantics<parallel>, #tpu.dimension_semantics<parallel>, #tpu.dimension_semantics<arbitrary>], iteration_bounds = array<i64: 1, 1, 1>, scalar_prefetch = 0 : i64, scratch_operands = 1 : i64, tpu.core_type = #tpu.core_type<tc>, window_params = [{transform_indices = @transform_0, window_bounds = array<i64: 128, 128>}, {transform_indices = @transform_1, window_bounds = array<i64: 128, 128>}, {transform_indices = @transform_2, window_bounds = array<i64: 1, 128>}, {transform_indices = @transform_3, window_bounds = array<i64: 1, 128>}, {transform_indices = @transform_4, window_bounds = array<i64: 128, 128>}, {transform_indices = @transform_5, window_bounds = array<i64: 128, 128>}]} {
    %c0_i32 = arith.constant 0 : i32
    %0 = arith.cmpi eq, %arg2, %c0_i32 : i32
    %1 = arith.extui %0 : i1 to i32
    %c0_i32_0 = arith.constant 0 : i32
    %2 = arith.cmpi ne, %1, %c0_i32_0 : i32
    scf.if %2 {
      %cst_15 = arith.constant 0.000000e+00 : f32
      %21 = vector.broadcast %cst_15 : f32 to vector<128x128xf32>
      %c0_16 = arith.constant 0 : index
      %c0_17 = arith.constant 0 : index
      %22 = vector.load %arg9[%c0_16, %c0_17] : memref<128x128xf32, #tpu.memory_space<vmem>>, vector<128x128xf32>
      tpu.vector_store %arg9[%c0_16, %c0_17], %21 {strides = array<i32>} : memref<128x128xf32, #tpu.memory_space<vmem>>, vector<128x128xf32>,
    } else {
    }
    %c0 = arith.constant 0 : index
    %c0_1 = arith.constant 0 : index
    %3 = vector.load %arg3[%c0, %c0_1] : memref<128x128xf32, #tpu.memory_space<vmem>>, vector<128x128xf32>
    %c0_2 = arith.constant 0 : index
    %c0_3 = arith.constant 0 : index
    %4 = vector.load %arg5[%c0_2, %c0_3] : memref<1x128xf32, #tpu.memory_space<vmem>>, vector<1x128xf32>
    %5 = vector.broadcast %4 : vector<1x128xf32> to vector<128x128xf32>
    %6 = arith.mulf %3, %5 : vector<128x128xf32>
    %c0_4 = arith.constant 0 : index
    %c0_5 = arith.constant 0 : index
    %7 = vector.load %arg6[%c0_4, %c0_5] : memref<1x128xf32, #tpu.memory_space<vmem>>, vector<1x128xf32>
    %8 = vector.broadcast %7 : vector<1x128xf32> to vector<128x128xf32>
    %9 = arith.addf %6, %8 : vector<128x128xf32>
    %cst = arith.constant 0.000000e+00 : f32
    %10 = vector.broadcast %cst : f32 to vector<128x128xf32>
    %11 = arith.maximumf %9, %10 : vector<128x128xf32>
    %c0_6 = arith.constant 0 : index
    %c0_7 = arith.constant 0 : index
    %12 = vector.load %arg9[%c0_6, %c0_7] : memref<128x128xf32, #tpu.memory_space<vmem>>, vector<128x128xf32>
    %13 = arith.truncf %11 : vector<128x128xf32> to vector<128x128xbf16>
    %c0_8 = arith.constant 0 : index
    %c0_9 = arith.constant 0 : index
    %14 = vector.load %arg4[%c0_8, %c0_9] : memref<128x128xbf16, #tpu.memory_space<vmem>>, vector<128x128xbf16>
    %cst_10 = arith.constant dense<0.000000e+00> : vector<128x128xf32>
    %15 = tpu.matmul %13, %14, %cst_10 {dimension_numbers = #tpu.dot_dimension_numbers<[1], [0], [0], [1], [0, 0, 1, 1], [], []>} : vector<128x128xbf16>, vector<128x128xbf16>, vector<128x128xf32> -> vector<128x128xf32>
    %16 = arith.addf %12, %15 : vector<128x128xf32>
    %c0_11 = arith.constant 0 : index
    %c0_12 = arith.constant 0 : index
    %17 = vector.load %arg9[%c0_11, %c0_12] : memref<128x128xf32, #tpu.memory_space<vmem>>, vector<128x128xf32>
    tpu.vector_store %arg9[%c0_11, %c0_12], %16 {strides = array<i32>} : memref<128x128xf32, #tpu.memory_space<vmem>>, vector<128x128xf32>,
    %c0_i32_13 = arith.constant 0 : i32
    %18 = arith.cmpi eq, %arg2, %c0_i32_13 : i32
    %19 = arith.extui %18 : i1 to i32
    %c0_i32_14 = arith.constant 0 : i32
    %20 = arith.cmpi ne, %19, %c0_i32_14 : i32
    scf.if %20 {
      %c0_15 = arith.constant 0 : index
      %c0_16 = arith.constant 0 : index
      %21 = vector.load %arg9[%c0_15, %c0_16] : memref<128x128xf32, #tpu.memory_space<vmem>>, vector<128x128xf32>
      %c0_17 = arith.constant 0 : index
      %c0_18 = arith.constant 0 : index
      %22 = vector.load %arg7[%c0_17, %c0_18] : memref<128x128xf32, #tpu.memory_space<vmem>>, vector<128x128xf32>
      %23 = arith.addf %21, %22 : vector<128x128xf32>
      %c0_19 = arith.constant 0 : index
      %c0_20 = arith.constant 0 : index
      %24 = vector.load %arg8[%c0_19, %c0_20] : memref<128x128xf32, #tpu.memory_space<vmem>>, vector<128x128xf32>
      tpu.vector_store %arg8[%c0_19, %c0_20], %23 {strides = array<i32>} : memref<128x128xf32, #tpu.memory_space<vmem>>, vector<128x128xf32>,
    } else {
    }
    return
  }
  func.func @transform_0(%arg0: i32, %arg1: i32, %arg2: i32) -> (i32, i32) {
    %c0_i32 = arith.constant 0 : i32
    return %arg0, %arg2 : i32, i32
  }
  func.func @transform_1(%arg0: i32, %arg1: i32, %arg2: i32) -> (i32, i32) {
    %c0_i32 = arith.constant 0 : i32
    return %arg2, %arg1 : i32, i32
  }
  func.func @transform_2(%arg0: i32, %arg1: i32, %arg2: i32) -> (i32, i32) {
    %c0_i32 = arith.constant 0 : i32
    %c0_i32_0 = arith.constant 0 : i32
    return %c0_i32, %arg2 : i32, i32
  }
  func.func @transform_3(%arg0: i32, %arg1: i32, %arg2: i32) -> (i32, i32) {
    %c0_i32 = arith.constant 0 : i32
    %c0_i32_0 = arith.constant 0 : i32
    return %c0_i32, %arg2 : i32, i32
  }
  func.func @transform_4(%arg0: i32, %arg1: i32, %arg2: i32) -> (i32, i32) {
    %c0_i32 = arith.constant 0 : i32
    return %arg0, %arg1 : i32, i32
  }
  func.func @transform_5(%arg0: i32, %arg1: i32, %arg2: i32) -> (i32, i32) {
    %c0_i32 = arith.constant 0 : i32
    return %arg0, %arg1 : i32, i32
  }
}

module attributes {stable_mosaic.version = 11 : i64} {
  func.func @kernel(%arg0: i32, %arg1: i32, %arg2: i32, %arg3: memref<128x128xf32, #tpu.memory_space<vmem>>, %arg4: memref<128x128xbf16, #tpu.memory_space<vmem>>, %arg5: memref<1x128xf32, #tpu.memory_space<vmem>>, %arg6: memref<1x128xf32, #tpu.memory_space<vmem>>, %arg7: memref<128x128xf32, #tpu.memory_space<vmem>>, %arg8: memref<128x128xf32, #tpu.memory_space<vmem>>) attributes {dimension_semantics = [#tpu.dimension_semantics<parallel>, #tpu.dimension_semantics<parallel>, #tpu.dimension_semantics<arbitrary>], iteration_bounds = array<i64: 1, 1, 1>, scalar_prefetch = 0 : i64, scratch_operands = 1 : i64, tpu.core_type = #tpu.core_type<tc>, window_params = [{transform_indices = @transform_0, window_bounds = array<i64: 128, 128>}, {transform_indices = @transform_1, window_bounds = array<i64: 128, 128>}, {transform_indices = @transform_2, window_bounds = array<i64: 1, 128>}, {transform_indices = @transform_3, window_bounds = array<i64: 1, 128>}, {transform_indices = @transform_4, window_bounds = array<i64: 128, 128>}]} {
    %c0_i32 = arith.constant 0 : i32
    %0 = arith.cmpi eq, %arg2, %c0_i32 : i32
    %1 = arith.extui %0 : i1 to i32
    %c0_i32_0 = arith.constant 0 : i32
    %2 = arith.cmpi ne, %1, %c0_i32_0 : i32
    scf.if %2 {
      %cst_15 = arith.constant 0.000000e+00 : f32
      %21 = vector.broadcast %cst_15 : f32 to vector<128x128xf32>
      %c0_16 = arith.constant 0 : index
      %c0_17 = arith.constant 0 : index
      %22 = vector.load %arg8[%c0_16, %c0_17] : memref<128x128xf32, #tpu.memory_space<vmem>>, vector<128x128xf32>
      tpu.vector_store %arg8[%c0_16, %c0_17], %21 {strides = array<i32>} : memref<128x128xf32, #tpu.memory_space<vmem>>, vector<128x128xf32>,
    } else {
    }
    %c0 = arith.constant 0 : index
    %c0_1 = arith.constant 0 : index
    %3 = vector.load %arg3[%c0, %c0_1] : memref<128x128xf32, #tpu.memory_space<vmem>>, vector<128x128xf32>
    %c0_2 = arith.constant 0 : index
    %c0_3 = arith.constant 0 : index
    %4 = vector.load %arg5[%c0_2, %c0_3] : memref<1x128xf32, #tpu.memory_space<vmem>>, vector<1x128xf32>
    %5 = vector.broadcast %4 : vector<1x128xf32> to vector<128x128xf32>
    %6 = arith.mulf %3, %5 : vector<128x128xf32>
    %c0_4 = arith.constant 0 : index
    %c0_5 = arith.constant 0 : index
    %7 = vector.load %arg6[%c0_4, %c0_5] : memref<1x128xf32, #tpu.memory_space<vmem>>, vector<1x128xf32>
    %8 = vector.broadcast %7 : vector<1x128xf32> to vector<128x128xf32>
    %9 = arith.addf %6, %8 : vector<128x128xf32>
    %cst = arith.constant 0.000000e+00 : f32
    %10 = vector.broadcast %cst : f32 to vector<128x128xf32>
    %11 = arith.maximumf %9, %10 : vector<128x128xf32>
    %c0_6 = arith.constant 0 : index
    %c0_7 = arith.constant 0 : index
    %12 = vector.load %arg8[%c0_6, %c0_7] : memref<128x128xf32, #tpu.memory_space<vmem>>, vector<128x128xf32>
    %13 = arith.truncf %11 : vector<128x128xf32> to vector<128x128xbf16>
    %c0_8 = arith.constant 0 : index
    %c0_9 = arith.constant 0 : index
    %14 = vector.load %arg4[%c0_8, %c0_9] : memref<128x128xbf16, #tpu.memory_space<vmem>>, vector<128x128xbf16>
    %cst_10 = arith.constant dense<0.000000e+00> : vector<128x128xf32>
    %15 = tpu.matmul %13, %14, %cst_10 {dimension_numbers = #tpu.dot_dimension_numbers<[1], [0], [0], [1], [0, 0, 1, 1], [], []>} : vector<128x128xbf16>, vector<128x128xbf16>, vector<128x128xf32> -> vector<128x128xf32>
    %16 = arith.addf %12, %15 : vector<128x128xf32>
    %c0_11 = arith.constant 0 : index
    %c0_12 = arith.constant 0 : index
    %17 = vector.load %arg8[%c0_11, %c0_12] : memref<128x128xf32, #tpu.memory_space<vmem>>, vector<128x128xf32>
    tpu.vector_store %arg8[%c0_11, %c0_12], %16 {strides = array<i32>} : memref<128x128xf32, #tpu.memory_space<vmem>>, vector<128x128xf32>,
    %c0_i32_13 = arith.constant 0 : i32
    %18 = arith.cmpi eq, %arg2, %c0_i32_13 : i32
    %19 = arith.extui %18 : i1 to i32
    %c0_i32_14 = arith.constant 0 : i32
    %20 = arith.cmpi ne, %19, %c0_i32_14 : i32
    scf.if %20 {
      %c0_15 = arith.constant 0 : index
      %c0_16 = arith.constant 0 : index
      %21 = vector.load %arg8[%c0_15, %c0_16] : memref<128x128xf32, #tpu.memory_space<vmem>>, vector<128x128xf32>
      %c0_17 = arith.constant 0 : index
      %c0_18 = arith.constant 0 : index
      %22 = vector.load %arg7[%c0_17, %c0_18] : memref<128x128xf32, #tpu.memory_space<vmem>>, vector<128x128xf32>
      tpu.vector_store %arg7[%c0_17, %c0_18], %21 {strides = array<i32>} : memref<128x128xf32, #tpu.memory_space<vmem>>, vector<128x128xf32>,
    } else {
    }
    return
  }
  func.func @transform_0(%arg0: i32, %arg1: i32, %arg2: i32) -> (i32, i32) {
    %c0_i32 = arith.constant 0 : i32
    return %arg0, %arg2 : i32, i32
  }
  func.func @transform_1(%arg0: i32, %arg1: i32, %arg2: i32) -> (i32, i32) {
    %c0_i32 = arith.constant 0 : i32
    return %arg2, %arg1 : i32, i32
  }
  func.func @transform_2(%arg0: i32, %arg1: i32, %arg2: i32) -> (i32, i32) {
    %c0_i32 = arith.constant 0 : i32
    %c0_i32_0 = arith.constant 0 : i32
    return %c0_i32, %arg2 : i32, i32
  }
  func.func @transform_3(%arg0: i32, %arg1: i32, %arg2: i32) -> (i32, i32) {
    %c0_i32 = arith.constant 0 : i32
    %c0_i32_0 = arith.constant 0 : i32
    return %c0_i32, %arg2 : i32, i32
  }
  func.func @transform_4(%arg0: i32, %arg1: i32, %arg2: i32) -> (i32, i32) {
    %c0_i32 = arith.constant 0 : i32
    return %arg0, %arg1 : i32, i32
  }
}

</mosaic_0001>

<bundles_post_ra>
// kernel: forward.7
= control target key start
LH: loop header
LB: loop body
LE: loop exit
PB: predicated region body
PF: predicated region fallthrough
CT: control target
= control target key end

     0   :  { %s896_s0 = inlined_call_operand.vmem [shape: f32[512,128], index: 0, kind: input, shape index: {}]   ;;  %s897_s1 = inlined_call_operand.vmem [shape: f32[1,128], index: 1, kind: input, shape index: {}]   ;;  %s898_s2 = inlined_call_operand.vmem [shape: f32[1,128], index: 2, kind: input, shape index: {}]   ;;  %s899_s3 = inlined_call_operand.vmem [shape: f32[512,128], index: 3, kind: output, shape index: {}]  }
   0x1   :  { %v14_v0 = vld [vmem:[%s896_s0] sm:$0xff]  ;;  %v15_v4 = vld [vmem:[%s896_s0 + $0x8] sm:$0xff]  ;;  %v16_v5 = vld [vmem:[%s896_s0 + $0x10] sm:$0xff] }
   0x2   :  { %v380_v1 = vld [vmem:[%s897_s1] ss:$0 sm:$0xff]  ;;  %v17_v6 = vld [vmem:[%s896_s0 + $0x18] sm:$0xff]  ;;  %v19_v11 = vld [vmem:[%s896_s0 + $0x28] sm:$0xff] }
   0x3   :  { %v385_v2 = vld [vmem:[%s898_s2] ss:$0 sm:$0xff]  ;;  %v85_v3 = vmul.f32 %v380_v1, %v14_v0  ;;  %v86_v7 = vmul.f32 %v380_v1, %v15_v4  ;;  %v87_v8 = vmul.f32 %v380_v1, %v16_v5  ;;  %v88_v9 = vmul.f32 %v380_v1, %v17_v6  ;;  %v20_v12 = vld [vmem:[%s896_s0 + $0x30] sm:$0xff]  ;;  %v21_v17 = vld [vmem:[%s896_s0 + $0x38] sm:$0xff] }
   0x4   :  { %v18_v10 = vld [vmem:[%s896_s0 + $0x20] sm:$0xff]  ;;  %v90_v15 = vmul.f32 %v380_v1, %v19_v11  ;;  %v91_v16 = vmul.f32 %v380_v1, %v20_v12  ;;  %v92_v21 = vmul.f32 %v380_v1, %v21_v17  ;;  %v23_v27 = vld [vmem:[%s896_s0 + $0x48] sm:$0xff]  ;;  %v24_v28 = vld [vmem:[%s896_s0 + $0x50] sm:$0xff] }
   0x5   :  { %v156_v13 = vadd.f32 %v385_v2, %v85_v3  ;;  %v89_v14 = vmul.f32 %v380_v1, %v18_v10  ;;  %v157_v18 = vadd.f32 %v385_v2, %v86_v7  ;;  %v158_v19 = vadd.f32 %v385_v2, %v87_v8  ;;  %v22_v22 = vld [vmem:[%s896_s0 + $0x40] sm:$0xff]  ;;  %v25_v29 = vld [vmem:[%s896_s0 + $0x58] sm:$0xff]  ;;  %v27_v35 = vld [vmem:[%s896_s0 + $0x68] sm:$0xff] }
   0x6   :  { %v159_v20 = vadd.f32 %v385_v2, %v88_v9  ;;  %v161_v25 = vadd.f32 %v385_v2, %v90_v15  ;;  %v162_v26 = vadd.f32 %v385_v2, %v91_v16  ;;  %v163_v33 = vadd.f32 %v385_v2, %v92_v21  ;;  %v26_v34 = vld [vmem:[%s896_s0 + $0x60] sm:$0xff]  ;;  %v28_v36 = vld [vmem:[%s896_s0 + $0x70] sm:$0xff]  ;;  %v29_v41 = vld [vmem:[%s896_s0 + $0x78] sm:$0xff] }
   0x7   :  { %v220_v23 = vmax.f32 %v156_v13, 0.0  ;;  %v160_v24 = vadd.f32 %v385_v2, %v89_v14  ;;  %v221_v30 = vmax.f32 %v157_v18, 0.0  ;;  %v222_v31 = vmax.f32 %v158_v19, 0.0  ;;  %v30_v54 = vld [vmem:[%s896_s0 + $0x80] sm:$0xff]  ;;  %v31_v59 = vld [vmem:[%s896_s0 + $0x88] sm:$0xff]  ;;  %v32_v60 = vld [vmem:[%s896_s0 + $0x90] sm:$0xff] }
   0x8   :  { %v223_v32 = vmax.f32 %v159_v20, 0.0  ;;  %v225_v38 = vmax.f32 %v161_v25, 0.0  ;;  %v226_v39 = vmax.f32 %v162_v26, 0.0  ;;  %v93_v40 = vmul.f32 %v380_v1, %v22_v22  ;;  %v33_v61 = vld [vmem:[%s896_s0 + $0x98] sm:$0xff]  ;;  %v34_v4 = vld [vmem:[%s896_s0 + $0xa0] sm:$0xff]  ;;  %v35_v5 = vld [vmem:[%s896_s0 + $0xa8] sm:$0xff] }
   0x9   :  { %284 = vst [vmem:[%s899_s3] sm:$0xff] %v220_v23  ;;  %v224_v37 = vmax.f32 %v160_v24, 0.0  ;;  %285 = vst [vmem:[%s899_s3 + $0x8] sm:$0xff] %v221_v30  ;;  %v227_v42 = vmax.f32 %v163_v33, 0.0  ;;  %v94_v43 = vmul.f32 %v380_v1, %v23_v27  ;;  %v95_v44 = vmul.f32 %v380_v1, %v24_v28  ;;  %v36_v6 = vld [vmem:[%s896_s0 + $0xb0] sm:$0xff]  ;;  %v37_v11 = vld [vmem:[%s896_s0 + $0xb8] sm:$0xff] }
   0xa   :  { %286 = vst [vmem:[%s899_s3 + $0x10] sm:$0xff] %v222_v31  ;;  %287 = vst [vmem:[%s899_s3 + $0x18] sm:$0xff] %v223_v32  ;;  %v96_v45 = vmul.f32 %v380_v1, %v25_v29  ;;  %v164_v46 = vadd.f32 %v385_v2, %v93_v40  ;;  %v97_v47 = vmul.f32 %v380_v1, %v26_v34  ;;  %v38_v24 = vld [vmem:[%s896_s0 + $0xc0] sm:$0xff]  ;;  %v39_v29 = vld [vmem:[%s896_s0 + $0xc8] sm:$0xff] }
   0xb   :  { %288 = vst [vmem:[%s899_s3 + $0x20] sm:$0xff] %v224_v37  ;;  %289 = vst [vmem:[%s899_s3 + $0x28] sm:$0xff] %v225_v38  ;;  %v98_v48 = vmul.f32 %v380_v1, %v27_v35  ;;  %v99_v49 = vmul.f32 %v380_v1, %v28_v36  ;;  %v165_v50 = vadd.f32 %v385_v2, %v94_v43  ;;  %v40_v30 = vld [vmem:[%s896_s0 + $0xd0] sm:$0xff]  ;;  %v41_v31 = vld [vmem:[%s896_s0 + $0xd8] sm:$0xff] }
   0xc   :  { %290 = vst [vmem:[%s899_s3 + $0x30] sm:$0xff] %v226_v39  ;;  %291 = vst [vmem:[%s899_s3 + $0x38] sm:$0xff] %v227_v42  ;;  %v166_v51 = vadd.f32 %v385_v2, %v95_v44  ;;  %v167_v52 = vadd.f32 %v385_v2, %v96_v45  ;;  %v100_v53 = vmul.f32 %v380_v1, %v29_v41  ;;  %v228_v55 = vmax.f32 %v164_v46, 0.0  ;;  %v42_v36 = vld [vmem:[%s896_s0 + $0xe0] sm:$0xff]  ;;  %v43_v37 = vld [vmem:[%s896_s0 + $0xe8] sm:$0xff] }
   0xd   :  { %v168_v56 = vadd.f32 %v385_v2, %v97_v47  ;;  %v169_v57 = vadd.f32 %v385_v2, %v98_v48  ;;  %v170_v58 = vadd.f32 %v385_v2, %v99_v49  ;;  %v229_v62 = vmax.f32 %v165_v50, 0.0  ;;  %v44_v38 = vld [vmem:[%s896_s0 + $0xf0] sm:$0xff]  ;;  %v45_v43 = vld [vmem:[%s896_s0 + $0xf8] sm:$0xff] }
   0xe   :  { %v230_v63 = vmax.f32 %v166_v51, 0.0  ;;  %v231_v0 = vmax.f32 %v167_v52, 0.0  ;;  %v171_v3 = vadd.f32 %v385_v2, %v100_v53  ;;  %292 = vst [vmem:[%s899_s3 + $0x40] sm:$0xff] %v228_v55  ;;  %v101_v10 = vmul.f32 %v380_v1, %v30_v54 }
   0xf   :  { %v232_v7 = vmax.f32 %v168_v56, 0.0  ;;  %v233_v8 = vmax.f32 %v169_v57, 0.0  ;;  %v234_v9 = vmax.f32 %v170_v58, 0.0  ;;  %293 = vst [vmem:[%s899_s3 + $0x48] sm:$0xff] %v229_v62  ;;  %v102_v13 = vmul.f32 %v380_v1, %v31_v59  ;;  %v46_v56 = vld [vmem:[%s896_s0 + $0x100] sm:$0xff]  ;;  %v48_v62 = vld [vmem:[%s896_s0 + $0x110] sm:$0xff] }
  0x10   :  { %294 = vst [vmem:[%s899_s3 + $0x50] sm:$0xff] %v230_v63  ;;  %295 = vst [vmem:[%s899_s3 + $0x58] sm:$0xff] %v231_v0  ;;  %v235_v12 = vmax.f32 %v171_v3, 0.0  ;;  %v103_v14 = vmul.f32 %v380_v1, %v32_v60  ;;  %v104_v15 = vmul.f32 %v380_v1, %v33_v61  ;;  %v172_v16 = vadd.f32 %v385_v2, %v101_v10  ;;  %v47_v61 = vld [vmem:[%s896_s0 + $0x108] sm:$0xff]  ;;  %v49_v63 = vld [vmem:[%s896_s0 + $0x118] sm:$0xff] }
  0x11   :  { %296 = vst [vmem:[%s899_s3 + $0x60] sm:$0xff] %v232_v7  ;;  %297 = vst [vmem:[%s899_s3 + $0x68] sm:$0xff] %v233_v8  ;;  %v105_v17 = vmul.f32 %v380_v1, %v34_v4  ;;  %v106_v18 = vmul.f32 %v380_v1, %v35_v5  ;;  %v107_v19 = vmul.f32 %v380_v1, %v36_v6  ;;  %v50_v6 = vld [vmem:[%s896_s0 + $0x120] sm:$0xff]  ;;  %v51_v7 = vld [vmem:[%s896_s0 + $0x128] sm:$0xff] }
  0x12   :  { %298 = vst [vmem:[%s899_s3 + $0x70] sm:$0xff] %v234_v9  ;;  %299 = vst [vmem:[%s899_s3 + $0x78] sm:$0xff] %v235_v12  ;;  %v173_v20 = vadd.f32 %v385_v2, %v102_v13  ;;  %v174_v21 = vadd.f32 %v385_v2, %v103_v14  ;;  %v175_v22 = vadd.f32 %v385_v2, %v104_v15  ;;  %v236_v25 = vmax.f32 %v172_v16, 0.0  ;;  %v52_v8 = vld [vmem:[%s896_s0 + $0x130] sm:$0xff]  ;;  %v53_v13 = vld [vmem:[%s896_s0 + $0x138] sm:$0xff] }
  0x13   :  { %v108_v23 = vmul.f32 %v380_v1, %v37_v11  ;;  %v176_v26 = vadd.f32 %v385_v2, %v105_v17  ;;  %v177_v27 = vadd.f32 %v385_v2, %v106_v18  ;;  %v178_v28 = vadd.f32 %v385_v2, %v107_v19 }
  0x14   :  { %v237_v32 = vmax.f32 %v173_v20, 0.0  ;;  %v238_v33 = vmax.f32 %v174_v21, 0.0  ;;  %v239_v34 = vmax.f32 %v175_v22, 0.0  ;;  %300 = vst [vmem:[%s899_s3 + $0x80] sm:$0xff] %v236_v25  ;;  %v109_v42 = vmul.f32 %v380_v1, %v38_v24 }
  0x15   :  { %v179_v35 = vadd.f32 %v385_v2, %v108_v23  ;;  %v240_v39 = vmax.f32 %v176_v26, 0.0  ;;  %v241_v40 = vmax.f32 %v177_v27, 0.0  ;;  %v242_v41 = vmax.f32 %v178_v28, 0.0  ;;  %v54_v26 = vld [vmem:[%s896_s0 + $0x140] sm:$0xff] }
  0x16   :  { %301 = vst [vmem:[%s899_s3 + $0x88] sm:$0xff] %v237_v32  ;;  %302 = vst [vmem:[%s899_s3 + $0x90] sm:$0xff] %v238_v33  ;;  %v110_v45 = vmul.f32 %v380_v1, %v39_v29  ;;  %v111_v46 = vmul.f32 %v380_v1, %v40_v30  ;;  %v112_v47 = vmul.f32 %v380_v1, %v41_v31  ;;  %v55_v31 = vld [vmem:[%s896_s0 + $0x148] sm:$0xff]  ;;  %v56_v32 = vld [vmem:[%s896_s0 + $0x150] sm:$0xff] }
  0x17   :  { %303 = vst [vmem:[%s899_s3 + $0x98] sm:$0xff] %v239_v34  ;;  %v243_v44 = vmax.f32 %v179_v35, 0.0  ;;  %304 = vst [vmem:[%s899_s3 + $0xa0] sm:$0xff] %v240_v39  ;;  %v180_v48 = vadd.f32 %v385_v2, %v109_v42  ;;  %v113_v49 = vmul.f32 %v380_v1, %v42_v36  ;;  %v114_v50 = vmul.f32 %v380_v1, %v43_v37  ;;  %v57_v33 = vld [vmem:[%s896_s0 + $0x158] sm:$0xff]  ;;  %v59_v39 = vld [vmem:[%s896_s0 + $0x168] sm:$0xff] }
  0x18   :  { %305 = vst [vmem:[%s899_s3 + $0xa8] sm:$0xff] %v241_v40  ;;  %306 = vst [vmem:[%s899_s3 + $0xb0] sm:$0xff] %v242_v41  ;;  %v115_v51 = vmul.f32 %v380_v1, %v44_v38  ;;  %v181_v52 = vadd.f32 %v385_v2, %v110_v45  ;;  %v182_v53 = vadd.f32 %v385_v2, %v111_v46  ;;  %v58_v38 = vld [vmem:[%s896_s0 + $0x160] sm:$0xff]  ;;  %v60_v40 = vld [vmem:[%s896_s0 + $0x170] sm:$0xff] }
  0x19   :  { %307 = vst [vmem:[%s899_s3 + $0xb8] sm:$0xff] %v243_v44  ;;  %v183_v54 = vadd.f32 %v385_v2, %v112_v47  ;;  %v116_v55 = vmul.f32 %v380_v1, %v45_v43  ;;  %v244_v57 = vmax.f32 %v180_v48, 0.0  ;;  %v184_v58 = vadd.f32 %v385_v2, %v113_v49  ;;  %v61_v45 = vld [vmem:[%s896_s0 + $0x178] sm:$0xff] }
  0x1a   :  { %v185_v59 = vadd.f32 %v385_v2, %v114_v50  ;;  %v186_v60 = vadd.f32 %v385_v2, %v115_v51  ;;  %v245_v0 = vmax.f32 %v181_v52, 0.0  ;;  %v246_v3 = vmax.f32 %v182_v53, 0.0 }
  0x1b   :  { %v247_v4 = vmax.f32 %v183_v54, 0.0  ;;  %v187_v5 = vadd.f32 %v385_v2, %v116_v55  ;;  %308 = vst [vmem:[%s899_s3 + $0xc0] sm:$0xff] %v244_v57  ;;  %v248_v9 = vmax.f32 %v184_v58, 0.0  ;;  %v117_v12 = vmul.f32 %v380_v1, %v46_v56  ;;  %v62_v58 = vld [vmem:[%s896_s0 + $0x180] sm:$0xff] }
  0x1c   :  { %v249_v10 = vmax.f32 %v185_v59, 0.0  ;;  %v250_v11 = vmax.f32 %v186_v60, 0.0  ;;  %309 = vst [vmem:[%s899_s3 + $0xc8] sm:$0xff] %v245_v0  ;;  %310 = vst [vmem:[%s899_s3 + $0xd0] sm:$0xff] %v246_v3  ;;  %v118_v15 = vmul.f32 %v380_v1, %v47_v61  ;;  %v119_v16 = vmul.f32 %v380_v1, %v48_v62  ;;  %v64_v0 = vld [vmem:[%s896_s0 + $0x190] sm:$0xff]  ;;  %v65_v3 = vld [vmem:[%s896_s0 + $0x198] sm:$0xff] }
  0x1d   :  { %311 = vst [vmem:[%s899_s3 + $0xd8] sm:$0xff] %v247_v4  ;;  %v251_v14 = vmax.f32 %v187_v5, 0.0  ;;  %v120_v17 = vmul.f32 %v380_v1, %v49_v63  ;;  %312 = vst [vmem:[%s899_s3 + $0xe0] sm:$0xff] %v248_v9  ;;  %v188_v18 = vadd.f32 %v385_v2, %v117_v12  ;;  %v121_v19 = vmul.f32 %v380_v1, %v50_v6  ;;  %v63_v63 = vld [vmem:[%s896_s0 + $0x188] sm:$0xff] }
  0x1e   :  { %313 = vst [vmem:[%s899_s3 + $0xe8] sm:$0xff] %v249_v10  ;;  %314 = vst [vmem:[%s899_s3 + $0xf0] sm:$0xff] %v250_v11  ;;  %v122_v20 = vmul.f32 %v380_v1, %v51_v7  ;;  %v123_v21 = vmul.f32 %v380_v1, %v52_v8  ;;  %v189_v22 = vadd.f32 %v385_v2, %v118_v15  ;;  %v66_v8 = vld [vmem:[%s896_s0 + $0x1a0] sm:$0xff]  ;;  %v67_v9 = vld [vmem:[%s896_s0 + $0x1a8] sm:$0xff] }
  0x1f   :  { %315 = vst [vmem:[%s899_s3 + $0xf8] sm:$0xff] %v251_v14  ;;  %v190_v23 = vadd.f32 %v385_v2, %v119_v16  ;;  %v191_v24 = vadd.f32 %v385_v2, %v120_v17  ;;  %v124_v25 = vmul.f32 %v380_v1, %v53_v13  ;;  %v252_v27 = vmax.f32 %v188_v18, 0.0  ;;  %v68_v10 = vld [vmem:[%s896_s0 + $0x1b0] sm:$0xff]  ;;  %v69_v15 = vld [vmem:[%s896_s0 + $0x1b8] sm:$0xff] }
  0x20   :  { %v192_v28 = vadd.f32 %v385_v2, %v121_v19  ;;  %v193_v29 = vadd.f32 %v385_v2, %v122_v20  ;;  %v194_v30 = vadd.f32 %v385_v2, %v123_v21  ;;  %v253_v34 = vmax.f32 %v189_v22, 0.0 }
  0x21   :  { %v254_v35 = vmax.f32 %v190_v23, 0.0  ;;  %v255_v36 = vmax.f32 %v191_v24, 0.0  ;;  %v195_v37 = vadd.f32 %v385_v2, %v124_v25  ;;  %316 = vst [vmem:[%s899_s3 + $0x100] sm:$0xff] %v252_v27  ;;  %v125_v44 = vmul.f32 %v380_v1, %v54_v26 }
  0x22   :  { %v256_v41 = vmax.f32 %v192_v28, 0.0  ;;  %v257_v42 = vmax.f32 %v193_v29, 0.0  ;;  %v258_v43 = vmax.f32 %v194_v30, 0.0  ;;  %317 = vst [vmem:[%s899_s3 + $0x108] sm:$0xff] %v253_v34  ;;  %v126_v47 = vmul.f32 %v380_v1, %v55_v31  ;;  %v70_v28 = vld [vmem:[%s896_s0 + $0x1c0] sm:$0xff]  ;;  %v72_v34 = vld [vmem:[%s896_s0 + $0x1d0] sm:$0xff] }
  0x23   :  { %318 = vst [vmem:[%s899_s3 + $0x110] sm:$0xff] %v254_v35  ;;  %319 = vst [vmem:[%s899_s3 + $0x118] sm:$0xff] %v255_v36  ;;  %v259_v46 = vmax.f32 %v195_v37, 0.0  ;;  %v127_v48 = vmul.f32 %v380_v1, %v56_v32  ;;  %v128_v49 = vmul.f32 %v380_v1, %v57_v33  ;;  %v196_v50 = vadd.f32 %v385_v2, %v125_v44  ;;  %v71_v33 = vld [vmem:[%s896_s0 + $0x1c8] sm:$0xff]  ;;  %v73_v35 = vld [vmem:[%s896_s0 + $0x1d8] sm:$0xff] }
  0x24   :  { %320 = vst [vmem:[%s899_s3 + $0x120] sm:$0xff] %v256_v41  ;;  %321 = vst [vmem:[%s899_s3 + $0x128] sm:$0xff] %v257_v42  ;;  %v129_v51 = vmul.f32 %v380_v1, %v58_v38  ;;  %v130_v52 = vmul.f32 %v380_v1, %v59_v39  ;;  %v131_v53 = vmul.f32 %v380_v1, %v60_v40  ;;  %v74_v40 = vld [vmem:[%s896_s0 + $0x1e0] sm:$0xff]  ;;  %v75_v41 = vld [vmem:[%s896_s0 + $0x1e8] sm:$0xff] }
  0x25   :  { %322 = vst [vmem:[%s899_s3 + $0x130] sm:$0xff] %v258_v43  ;;  %323 = vst [vmem:[%s899_s3 + $0x138] sm:$0xff] %v259_v46  ;;  %v197_v54 = vadd.f32 %v385_v2, %v126_v47  ;;  %v198_v55 = vadd.f32 %v385_v2, %v127_v48  ;;  %v199_v56 = vadd.f32 %v385_v2, %v128_v49  ;;  %v260_v59 = vmax.f32 %v196_v50, 0.0  ;;  %v76_v42 = vld [vmem:[%s896_s0 + $0x1f0] sm:$0xff]  ;;  %v77_v47 = vld [vmem:[%s896_s0 + $0x1f8] sm:$0xff] }
  0x26   :  { %v132_v57 = vmul.f32 %v380_v1, %v61_v45  ;;  %v200_v60 = vadd.f32 %v385_v2, %v129_v51  ;;  %v201_v61 = vadd.f32 %v385_v2, %v130_v52  ;;  %v202_v62 = vadd.f32 %v385_v2, %v131_v53 }
  0x27   :  { %v261_v4 = vmax.f32 %v197_v54, 0.0  ;;  %v262_v5 = vmax.f32 %v198_v55, 0.0  ;;  %v263_v6 = vmax.f32 %v199_v56, 0.0  ;;  %324 = vst [vmem:[%s899_s3 + $0x140] sm:$0xff] %v260_v59  ;;  %v133_v14 = vmul.f32 %v380_v1, %v62_v58 }
  0x28   :  { %v203_v7 = vadd.f32 %v385_v2, %v132_v57  ;;  %v264_v11 = vmax.f32 %v200_v60, 0.0  ;;  %v265_v12 = vmax.f32 %v201_v61, 0.0  ;;  %v266_v13 = vmax.f32 %v202_v62, 0.0 }
  0x29   :  { %325 = vst [vmem:[%s899_s3 + $0x148] sm:$0xff] %v261_v4  ;;  %326 = vst [vmem:[%s899_s3 + $0x150] sm:$0xff] %v262_v5  ;;  %v134_v17 = vmul.f32 %v380_v1, %v63_v63  ;;  %v135_v18 = vmul.f32 %v380_v1, %v64_v0  ;;  %v136_v19 = vmul.f32 %v380_v1, %v65_v3 }
  0x2a   :  { %327 = vst [vmem:[%s899_s3 + $0x158] sm:$0xff] %v263_v6  ;;  %v267_v16 = vmax.f32 %v203_v7, 0.0  ;;  %328 = vst [vmem:[%s899_s3 + $0x160] sm:$0xff] %v264_v11  ;;  %v204_v20 = vadd.f32 %v385_v2, %v133_v14  ;;  %v137_v21 = vmul.f32 %v380_v1, %v66_v8  ;;  %v138_v22 = vmul.f32 %v380_v1, %v67_v9 }
  0x2b   :  { %329 = vst [vmem:[%s899_s3 + $0x168] sm:$0xff] %v265_v12  ;;  %330 = vst [vmem:[%s899_s3 + $0x170] sm:$0xff] %v266_v13  ;;  %v139_v23 = vmul.f32 %v380_v1, %v68_v10  ;;  %v205_v24 = vadd.f32 %v385_v2, %v134_v17  ;;  %v206_v25 = vadd.f32 %v385_v2, %v135_v18 }
  0x2c   :  { %331 = vst [vmem:[%s899_s3 + $0x178] sm:$0xff] %v267_v16  ;;  %v207_v26 = vadd.f32 %v385_v2, %v136_v19  ;;  %v140_v27 = vmul.f32 %v380_v1, %v69_v15  ;;  %v268_v29 = vmax.f32 %v204_v20, 0.0  ;;  %v208_v30 = vadd.f32 %v385_v2, %v137_v21 }
  0x2d   :  { %v209_v31 = vadd.f32 %v385_v2, %v138_v22  ;;  %v210_v32 = vadd.f32 %v385_v2, %v139_v23  ;;  %v269_v36 = vmax.f32 %v205_v24, 0.0  ;;  %v270_v37 = vmax.f32 %v206_v25, 0.0 }
  0x2e   :  { %v271_v38 = vmax.f32 %v207_v26, 0.0  ;;  %v211_v39 = vadd.f32 %v385_v2, %v140_v27  ;;  %332 = vst [vmem:[%s899_s3 + $0x180] sm:$0xff] %v268_v29  ;;  %v272_v43 = vmax.f32 %v208_v30, 0.0  ;;  %v141_v46 = vmul.f32 %v380_v1, %v70_v28 }
  0x2f   :  { %v273_v44 = vmax.f32 %v209_v31, 0.0  ;;  %v274_v45 = vmax.f32 %v210_v32, 0.0  ;;  %333 = vst [vmem:[%s899_s3 + $0x188] sm:$0xff] %v269_v36  ;;  %334 = vst [vmem:[%s899_s3 + $0x190] sm:$0xff] %v270_v37  ;;  %v142_v49 = vmul.f32 %v380_v1, %v71_v33  ;;  %v143_v50 = vmul.f32 %v380_v1, %v72_v34 }
  0x30   :  { %335 = vst [vmem:[%s899_s3 + $0x198] sm:$0xff] %v271_v38  ;;  %v275_v48 = vmax.f32 %v211_v39, 0.0  ;;  %v144_v51 = vmul.f32 %v380_v1, %v73_v35  ;;  %336 = vst [vmem:[%s899_s3 + $0x1a0] sm:$0xff] %v272_v43  ;;  %v212_v52 = vadd.f32 %v385_v2, %v141_v46  ;;  %v145_v53 = vmul.f32 %v380_v1, %v74_v40 }
  0x31   :  { %337 = vst [vmem:[%s899_s3 + $0x1a8] sm:$0xff] %v273_v44  ;;  %338 = vst [vmem:[%s899_s3 + $0x1b0] sm:$0xff] %v274_v45  ;;  %v146_v54 = vmul.f32 %v380_v1, %v75_v41  ;;  %v147_v55 = vmul.f32 %v380_v1, %v76_v42  ;;  %v213_v56 = vadd.f32 %v385_v2, %v142_v49 }
  0x32   :  { %339 = vst [vmem:[%s899_s3 + $0x1b8] sm:$0xff] %v275_v48  ;;  %v214_v57 = vadd.f32 %v385_v2, %v143_v50  ;;  %v215_v58 = vadd.f32 %v385_v2, %v144_v51  ;;  %v148_v59 = vmul.f32 %v380_v1, %v77_v47  ;;  %v276_v60 = vmax.f32 %v212_v52, 0.0 }
  0x33   :  { %v216_v61 = vadd.f32 %v385_v2, %v145_v53  ;;  %v217_v62 = vadd.f32 %v385_v2, %v146_v54  ;;  %v218_v63 = vadd.f32 %v385_v2, %v147_v55  ;;  %v277_v0 = vmax.f32 %v213_v56, 0.0 }
  0x34   :  { %v278_v3 = vmax.f32 %v214_v57, 0.0  ;;  %v279_v4 = vmax.f32 %v215_v58, 0.0  ;;  %v219_v5 = vadd.f32 %v385_v2, %v148_v59  ;;  %340 = vst [vmem:[%s899_s3 + $0x1c0] sm:$0xff] %v276_v60 }
  0x35   :  { %v280_v6 = vmax.f32 %v216_v61, 0.0  ;;  %v281_v7 = vmax.f32 %v217_v62, 0.0  ;;  %v282_v8 = vmax.f32 %v218_v63, 0.0  ;;  %341 = vst [vmem:[%s899_s3 + $0x1c8] sm:$0xff] %v277_v0 }
  0x36   :  { %342 = vst [vmem:[%s899_s3 + $0x1d0] sm:$0xff] %v278_v3  ;;  %343 = vst [vmem:[%s899_s3 + $0x1d8] sm:$0xff] %v279_v4  ;;  %v283_v1 = vmax.f32 %v219_v5, 0.0 }
  0x37   :  { %344 = vst [vmem:[%s899_s3 + $0x1e0] sm:$0xff] %v280_v6  ;;  %345 = vst [vmem:[%s899_s3 + $0x1e8] sm:$0xff] %v281_v7 }
  0x38   :  { %346 = vst [vmem:[%s899_s3 + $0x1f0] sm:$0xff] %v282_v8  ;;  %347 = vst [vmem:[%s899_s3 + $0x1f8] sm:$0xff] %v283_v1 }

// kernel: forward.6
= control target key start
LH: loop header
LB: loop body
LE: loop exit
PB: predicated region body
PF: predicated region fallthrough
CT: control target
= control target key end

     0   :  { %s1199_s15 = smov 0   ;;  %s1201_s16 = smov 0   ;;  %s1405_s0 = inlined_call_operand.vmem [shape: f32[512,128], index: 0, kind: input, shape index: {}]   ;;  %s1406_s1 = inlined_call_operand.vmem [shape: bf16[128,128], index: 1, kind: input, shape index: {}]   ;;  %s1407_s2 = inlined_call_operand.vmem [shape: f32[1,128], index: 2, kind: input, shape index: {}]   ;;  %s1408_s3 = inlined_call_operand.vmem [shape: f32[1,128], index: 3, kind: input, shape index: {}]   ;;  %s1409_s4 = inlined_call_operand.vmem [shape: f32[512,128], index: 4, kind: output, shape index: {}]  }
   0x1   :  { %s1203_s17 = smov 0  }
   0x2 LB: > { %s33_s18 = sadd.s32 1, %s1168_s16  ;;  %p1013_p0 = scmp.ge.s32.totalorder %s1172_s17, 1  ;;  %s1172_s17 = sphi %s1203_s17, %s14_s17   ;;  %s1168_s16 = sphi %s1201_s16, %s1411_s16   ;;  %s1164_s15 = sphi %s1199_s15, %s1410_s15  }
   0x3   : > { %p35_p1 = scmp.ge.s32.totalorder %s33_s18, 2  ;;  %p221_p2 = scmp.lt.s32.totalorder %s1172_s17, 3 }
   0x5   : > { %s1413_s18 = smov (%p35_p1, %s33_s18), 0  ;;  %p222_p3 = pnand %p1013_p0, %p221_p2 }
   0x6   : > { %v1142_v0 = vld [vmem:[%s1406_s1] sm:$0xff] (!%p222_p3)   ;;  %s1014_s21 = sshll.u32 (!%p222_p3), %s1164_s15, 5  ;;  %v1143_v1 = vld [vmem:[%s1406_s1 + $0x8] sm:$0xff] (!%p222_p3)   ;;  %v1144_v2 = vld [vmem:[%s1406_s1 + $0x10] sm:$0xff] (!%p222_p3)  }
   0x7   : > { %225 = sbr.rel (%p222_p3) target bundleno = 279 (0x117), region = 36  ;;  %p268_p4 = scmp.lt.s32.totalorder (!%p222_p3), %s1014_s21, 63  ;;  %1054 = vmatprep.subr.bf16.mxu0 (!%p222_p3), %v1142_v0  ;;  %1102 = vmatprep.subr.bf16.mxu1 (!%p222_p3), %v1142_v0  ;;  %v1145_v3 = vld [vmem:[%s1406_s1 + $0x18] sm:$0xff] (!%p222_p3)   ;;  %v1244_v6 = vld [vmem:[%s1407_s2] ss:$0 sm:$0xff] (!%p222_p3)  ;;  %v1147_v30 = vld [vmem:[%s1406_s1 + $0x28] sm:$0xff] (!%p222_p3)  }
   0x8   : > { %1055 = vmatpush3.bf16.msra.mxu0 (!%p222_p3), %v1142_v0  ;;  %1110 = vmatpush3.bf16.msra.mxu1 (!%p222_p3), %v1142_v0  ;;  %v1251_v9 = vld [vmem:[%s1408_s3] ss:$0 sm:$0xff] (!%p222_p3)  ;;  %v1148_v42 = vld [vmem:[%s1406_s1 + $0x30] sm:$0xff] (!%p222_p3)   ;;  %v1149_v60 = vld [vmem:[%s1406_s1 + $0x38] sm:$0xff] (!%p222_p3)  }
   0x9   : > { %1056 = vmatprep.subr.bf16.mxu0 (!%p222_p3), %v1143_v1  ;;  %1103 = vmatprep.subr.bf16.mxu1 (!%p222_p3), %v1143_v1  ;;  %v1146_v16 = vld [vmem:[%s1406_s1 + $0x20] sm:$0xff] (!%p222_p3)  }
   0xc   : > { %1057 = vmatpush3.bf16.msra.mxu0 (!%p222_p3), %v1143_v1  ;;  %1111 = vmatpush3.bf16.msra.mxu1 (!%p222_p3), %v1143_v1 }
   0xd   : > { %1058 = vmatprep.subr.bf16.mxu0 (!%p222_p3), %v1144_v2  ;;  %1104 = vmatprep.subr.bf16.mxu1 (!%p222_p3), %v1144_v2 }
   0xe   : > { %s1415_s21 = smov (!%p268_p4, %s1014_s21), 63 }
   0xf   : > { %s1015_s26 = sshll.u32 %s1415_s21, 3 }
  0x10   : > { %s1234_s29 = scalar_lea.vmem %s1405_s0, %s1015_s26  ;;  %1059 = vmatpush3.bf16.msra.mxu0 %v1144_v2  ;;  %1112 = vmatpush3.bf16.msra.mxu1 %v1144_v2  ;;  %s1362_s24 = scalar_lea.vmem %s1409_s4, %s1015_s26 }
  0x11   : > { %v337_v4 = vld [vmem:[%s1234_s29] sm:$0xff]  ;;  %v338_v5 = vld [vmem:[%s1234_s29 + $0x8] sm:$0xff]  ;;  %1060 = vmatprep.subr.bf16.mxu0 %v1145_v3  ;;  %1105 = vmatprep.subr.bf16.mxu1 %v1145_v3  ;;  %v339_v21 = vld [vmem:[%s1234_s29 + $0x10] sm:$0xff] }
  0x12   : > { %v376_v7 = vmul.f32 %v1244_v6, %v337_v4  ;;  %v377_v8 = vmul.f32 %v1244_v6, %v338_v5  ;;  %v353_v10 = vld [vmem:[%s1234_s29 + $0x80] sm:$0xff]  ;;  %v354_v11 = vld [vmem:[%s1234_s29 + $0x88] sm:$0xff]  ;;  %v340_v24 = vld [vmem:[%s1234_s29 + $0x18] sm:$0xff]  ;;  %v378_v32 = vmul.f32 %v1244_v6, %v339_v21 }
  0x13   : > { %v392_v12 = vmul.f32 %v1244_v6, %v353_v10  ;;  %v393_v13 = vmul.f32 %v1244_v6, %v354_v11  ;;  %v355_v25 = vld [vmem:[%s1234_s29 + $0x90] sm:$0xff]  ;;  %v356_v26 = vld [vmem:[%s1234_s29 + $0x98] sm:$0xff]  ;;  %v341_v28 = vld [vmem:[%s1234_s29 + $0x20] sm:$0xff]  ;;  %v379_v35 = vmul.f32 %v1244_v6, %v340_v24 }
  0x14   : > { %v415_v14 = vadd.f32 %v1251_v9, %v376_v7  ;;  %v416_v15 = vadd.f32 %v1251_v9, %v377_v8  ;;  %1061 = vmatpush3.bf16.msra.mxu0 %v1145_v3  ;;  %1113 = vmatpush3.bf16.msra.mxu1 %v1145_v3  ;;  %v342_v29 = vld [vmem:[%s1234_s29 + $0x28] sm:$0xff]  ;;  %v357_v33 = vld [vmem:[%s1234_s29 + $0xa0] sm:$0xff]  ;;  %v394_v36 = vmul.f32 %v1244_v6, %v355_v25  ;;  %v343_v44 = vld [vmem:[%s1234_s29 + $0x30] sm:$0xff] }
  0x15   : > { %v431_v17 = vadd.f32 %v1251_v9, %v392_v12  ;;  %v432_v18 = vadd.f32 %v1251_v9, %v393_v13  ;;  %1062 = vmatprep.subr.bf16.mxu0 %v1146_v16  ;;  %1106 = vmatprep.subr.bf16.mxu1 %v1146_v16  ;;  %v358_v34 = vld [vmem:[%s1234_s29 + $0xa8] sm:$0xff]  ;;  %v395_v37 = vmul.f32 %v1244_v6, %v356_v26  ;;  %v344_v48 = vld [vmem:[%s1234_s29 + $0x38] sm:$0xff]  ;;  %v359_v49 = vld [vmem:[%s1234_s29 + $0xb0] sm:$0xff] }
  0x16   : > { %v447_v19 = vmax.f32 %v415_v14, 0.0  ;;  %v448_v20 = vmax.f32 %v416_v15, 0.0  ;;  %v380_v38 = vmul.f32 %v1244_v6, %v341_v28  ;;  %v381_v39 = vmul.f32 %v1244_v6, %v342_v29  ;;  %v360_v50 = vld [vmem:[%s1234_s29 + $0xb8] sm:$0xff]  ;;  %v345_v53 = vld [vmem:[%s1234_s29 + $0x40] sm:$0xff]  ;;  %v346_v57 = vld [vmem:[%s1234_s29 + $0x48] sm:$0xff] }
  0x17   : > { %v463_v22 = vmax.f32 %v431_v17, 0.0  ;;  %v464_v23 = vmax.f32 %v432_v18, 0.0  ;;  %v396_v40 = vmul.f32 %v1244_v6, %v357_v33  ;;  %v397_v41 = vmul.f32 %v1244_v6, %v358_v34  ;;  %v361_v58 = vld [vmem:[%s1234_s29 + $0xc0] sm:$0xff]  ;;  %v362_v59 = vld [vmem:[%s1234_s29 + $0xc8] sm:$0xff]  ;;  %v348_v25 = vld [vmem:[%s1234_s29 + $0x58] sm:$0xff] }
  0x18   : > { %v511_v27 = vpack.c.bf16 %v448_v20, %v447_v19  ;;  %1063 = vmatpush3.bf16.msra.mxu0 %v1146_v16  ;;  %1114 = vmatpush3.bf16.msra.mxu1 %v1146_v16  ;;  %v417_v43 = vadd.f32 %v1251_v9, %v378_v32  ;;  %v418_v45 = vadd.f32 %v1251_v9, %v379_v35  ;;  %v347_v20 = vld [vmem:[%s1234_s29 + $0x50] sm:$0xff] }
  0x19   : > { %v519_v31 = vpack.c.bf16 %v464_v23, %v463_v22  ;;  %1064 = vmatprep.subr.bf16.mxu0 %v1147_v30  ;;  %1107 = vmatprep.subr.bf16.mxu1 %v1147_v30  ;;  %v433_v46 = vadd.f32 %v1251_v9, %v394_v36  ;;  %v434_v47 = vadd.f32 %v1251_v9, %v395_v37  ;;  %v363_v26 = vld [vmem:[%s1234_s29 + $0xd0] sm:$0xff]  ;;  %v350_v36 = vld [vmem:[%s1234_s29 + $0x68] sm:$0xff]  ;;  %v365_v37 = vld [vmem:[%s1234_s29 + $0xe0] sm:$0xff] }
  0x1a   : > { %1070 = vmatprep.mubr.bf16.mxu0 %v511_v27  ;;  %v419_v51 = vadd.f32 %v1251_v9, %v380_v38  ;;  %v420_v52 = vadd.f32 %v1251_v9, %v381_v39  ;;  %v435_v54 = vadd.f32 %v1251_v9, %v396_v40  ;;  %v436_v55 = vadd.f32 %v1251_v9, %v397_v41  ;;  %v364_v27 = vld [vmem:[%s1234_s29 + $0xd8] sm:$0xff]  ;;  %v366_v38 = vld [vmem:[%s1234_s29 + $0xe8] sm:$0xff] }
  0x1b   : > { %1086 = vmatprep.mubr.bf16.mxu1 %v519_v31  ;;  %v382_v56 = vmul.f32 %v1244_v6, %v343_v44  ;;  %v449_v61 = vmax.f32 %v417_v43, 0.0  ;;  %v383_v62 = vmul.f32 %v1244_v6, %v344_v48  ;;  %v398_v63 = vmul.f32 %v1244_v6, %v359_v49  ;;  %v349_v31 = vld [vmem:[%s1234_s29 + $0x60] sm:$0xff] }
  0x1c   : > { %1065 = vmatpush3.bf16.msra.mxu0 %v1147_v30  ;;  %1115 = vmatpush3.bf16.msra.mxu1 %v1147_v30  ;;  %v399_v0 = vmul.f32 %v1244_v6, %v360_v50  ;;  %v450_v1 = vmax.f32 %v418_v45, 0.0  ;;  %v465_v2 = vmax.f32 %v433_v46, 0.0  ;;  %v466_v3 = vmax.f32 %v434_v47, 0.0 }
  0x1d   : > { %1066 = vmatprep.subr.bf16.mxu0 %v1148_v42  ;;  %1108 = vmatprep.subr.bf16.mxu1 %v1148_v42  ;;  %v384_v4 = vmul.f32 %v1244_v6, %v345_v53  ;;  %v451_v5 = vmax.f32 %v419_v51, 0.0  ;;  %v385_v7 = vmul.f32 %v1244_v6, %v346_v57  ;;  %v400_v8 = vmul.f32 %v1244_v6, %v361_v58  ;;  %v351_v58 = vld [vmem:[%s1234_s29 + $0x70] sm:$0xff] }
  0x1e   : > { %v401_v10 = vmul.f32 %v1244_v6, %v362_v59  ;;  %v452_v11 = vmax.f32 %v420_v52, 0.0  ;;  %v467_v12 = vmax.f32 %v435_v54, 0.0  ;;  %v468_v13 = vmax.f32 %v436_v55, 0.0 }
  0x1f   : > { %v421_v14 = vadd.f32 %v1251_v9, %v382_v56  ;;  %v422_v15 = vadd.f32 %v1251_v9, %v383_v62  ;;  %v437_v16 = vadd.f32 %v1251_v9, %v398_v63  ;;  %v438_v17 = vadd.f32 %v1251_v9, %v399_v0  ;;  %v352_v63 = vld [vmem:[%s1234_s29 + $0x78] sm:$0xff]  ;;  %v367_v0 = vld [vmem:[%s1234_s29 + $0xf0] sm:$0xff] }
  0x20   : > { %1067 = vmatpush3.bf16.msra.mxu0 %v1148_v42  ;;  %1116 = vmatpush3.bf16.msra.mxu1 %v1148_v42  ;;  %v512_v18 = vpack.c.bf16 %v450_v1, %v449_v61  ;;  %v423_v19 = vadd.f32 %v1251_v9, %v384_v4  ;;  %v520_v21 = vpack.c.bf16 %v466_v3, %v465_v2  ;;  %v368_v1 = vld [vmem:[%s1234_s29 + $0xf8] sm:$0xff] }
  0x21   : > { %1068 = vmatprep.subr.bf16.mxu0 %v1149_v60  ;;  %1109 = vmatprep.subr.bf16.mxu1 %v1149_v60  ;;  %v424_v22 = vadd.f32 %v1251_v9, %v385_v7  ;;  %v439_v23 = vadd.f32 %v1251_v9, %v400_v8  ;;  %v440_v24 = vadd.f32 %v1251_v9, %v401_v10  ;;  %v453_v30 = vmax.f32 %v421_v14, 0.0 }
  0x22   : > { %v513_v28 = vpack.c.bf16 %v452_v11, %v451_v5  ;;  %v521_v29 = vpack.c.bf16 %v468_v13, %v467_v12  ;;  %v454_v32 = vmax.f32 %v422_v15, 0.0  ;;  %v469_v33 = vmax.f32 %v437_v16, 0.0 }
  0x23   : > { %v470_v34 = vmax.f32 %v438_v17, 0.0  ;;  %v386_v35 = vmul.f32 %v1244_v6, %v347_v20  ;;  %v455_v39 = vmax.f32 %v423_v19, 0.0  ;;  %v387_v40 = vmul.f32 %v1244_v6, %v348_v25 }
  0x24   : > { %1069 = vmatpush3.bf16.msra.mxu0 %v1149_v60  ;;  %1117 = vmatpush3.bf16.msra.mxu1 %v1149_v60  ;;  %v402_v41 = vmul.f32 %v1244_v6, %v363_v26  ;;  %v403_v42 = vmul.f32 %v1244_v6, %v364_v27  ;;  %v456_v43 = vmax.f32 %v424_v22, 0.0  ;;  %v471_v44 = vmax.f32 %v439_v23, 0.0 }
  0x25   : > { %v472_v45 = vmax.f32 %v440_v24, 0.0  ;;  %v388_v46 = vmul.f32 %v1244_v6, %v349_v31  ;;  %v389_v47 = vmul.f32 %v1244_v6, %v350_v36  ;;  %v404_v48 = vmul.f32 %v1244_v6, %v365_v37 }
  0x26   : > { %v405_v49 = vmul.f32 %v1244_v6, %v366_v38  ;;  %v425_v50 = vadd.f32 %v1251_v9, %v386_v35  ;;  %v426_v51 = vadd.f32 %v1251_v9, %v387_v40  ;;  %v441_v52 = vadd.f32 %v1251_v9, %v402_v41 }
  0x27   : > { %1071 = vmatmul.mubr.bf16.vlgmr.msra.gmra.mrb[0].mxu0 %v512_v18  ;;  %1087 = vmatmul.mubr.bf16.vlgmr.msra.gmra.mrb[0].mxu1 %v520_v21  ;;  %v442_v53 = vadd.f32 %v1251_v9, %v403_v42  ;;  %v514_v54 = vpack.c.bf16 %v454_v32, %v453_v30  ;;  %v522_v55 = vpack.c.bf16 %v470_v34, %v469_v33 }
  0x28   : > { %1074 = vmatprep.mubr.bf16.mxu0 %v513_v28  ;;  %1090 = vmatprep.mubr.bf16.mxu1 %v521_v29  ;;  %v515_v56 = vpack.c.bf16 %v456_v43, %v455_v39  ;;  %v523_v57 = vpack.c.bf16 %v472_v45, %v471_v44  ;;  %v427_v59 = vadd.f32 %v1251_v9, %v388_v46  ;;  %v457_v2 = vmax.f32 %v425_v50, 0.0 }
  0x29   : > { %v428_v60 = vadd.f32 %v1251_v9, %v389_v47  ;;  %v443_v61 = vadd.f32 %v1251_v9, %v404_v48  ;;  %v444_v62 = vadd.f32 %v1251_v9, %v405_v49  ;;  %v458_v3 = vmax.f32 %v426_v51, 0.0 }
  0x2a   : > { %v473_v4 = vmax.f32 %v441_v52, 0.0  ;;  %v474_v5 = vmax.f32 %v442_v53, 0.0  ;;  %v390_v7 = vmul.f32 %v1244_v6, %v351_v58  ;;  %v391_v8 = vmul.f32 %v1244_v6, %v352_v63 }
  0x2b   : > { %v406_v10 = vmul.f32 %v1244_v6, %v367_v0  ;;  %v407_v11 = vmul.f32 %v1244_v6, %v368_v1  ;;  %v459_v12 = vmax.f32 %v427_v59, 0.0  ;;  %v460_v13 = vmax.f32 %v428_v60, 0.0 }
  0x2c   : > { %v475_v14 = vmax.f32 %v443_v61, 0.0  ;;  %v476_v15 = vmax.f32 %v444_v62, 0.0  ;;  %v516_v16 = vpack.c.bf16 %v458_v3, %v457_v2  ;;  %v524_v17 = vpack.c.bf16 %v474_v5, %v473_v4 }
  0x2d   : > { %v429_v18 = vadd.f32 %v1251_v9, %v390_v7  ;;  %v430_v19 = vadd.f32 %v1251_v9, %v391_v8  ;;  %v445_v20 = vadd.f32 %v1251_v9, %v406_v10  ;;  %v446_v21 = vadd.f32 %v1251_v9, %v407_v11 }
  0x2e   : > { %v517_v22 = vpack.c.bf16 %v460_v13, %v459_v12  ;;  %v525_v23 = vpack.c.bf16 %v476_v15, %v475_v14 }
  0x2f   : > { %1075 = vmatmul.mubr.bf16.gmra.mrb[4].mxu0 %v514_v54  ;;  %1091 = vmatmul.mubr.bf16.gmra.mrb[4].mxu1 %v522_v55  ;;  %v461_v6 = vmax.f32 %v429_v18, 0.0  ;;  %v462_v24 = vmax.f32 %v430_v19, 0.0  ;;  %v477_v25 = vmax.f32 %v445_v20, 0.0  ;;  %v478_v26 = vmax.f32 %v446_v21, 0.0 }
  0x30   : > { %1078 = vmatprep.mubr.bf16.mxu0 %v515_v56  ;;  %1094 = vmatprep.mubr.bf16.mxu1 %v523_v57 }
  0x31   : > { %v518_v27 = vpack.c.bf16 %v462_v24, %v461_v6  ;;  %v526_v28 = vpack.c.bf16 %v478_v26, %v477_v25 }
  0x37   : > { %1079 = vmatmul.mubr.bf16.gmra.mrb[8].mxu0 %v516_v16  ;;  %1095 = vmatmul.mubr.bf16.gmra.mrb[8].mxu1 %v524_v17 }
  0x38   : > { %1082 = vmatprep.mubr.bf16.mxu0 %v517_v22  ;;  %1098 = vmatprep.mubr.bf16.mxu1 %v525_v23 }
  0x3f   : > { %1083 = vmatmul.mubr.bf16.gmra.mrb[12].mxu0 %v518_v27  ;;  %1099 = vmatmul.mubr.bf16.gmra.mrb[12].mxu1 %v526_v28 }
  0xfa   : > { %v1072_v9 = vpop.f32.mrb[0].mxu0  ;;  %v1088_v29 = vpop.f32.mrb[0].mxu1 }
  0xfb   : > { %853 = vst [vmem:[%s1362_s24 + $0x10] sm:$0xff] %v1072_v9  ;;  %869 = vst [vmem:[%s1362_s24 + $0x90] sm:$0xff] %v1088_v29  ;;  %v625_v30 = vpop.f32.mrb[1].mxu0  ;;  %v689_v31 = vpop.f32.mrb[1].mxu1 }
  0xfc   : > { %851 = vst [vmem:[%s1362_s24] sm:$0xff] %v625_v30  ;;  %867 = vst [vmem:[%s1362_s24 + $0x80] sm:$0xff] %v689_v31  ;;  %v1073_v32 = vpop.f32.mrb[2].mxu0  ;;  %v1089_v33 = vpop.f32.mrb[2].mxu1 }
  0xfd   : > { %854 = vst [vmem:[%s1362_s24 + $0x18] sm:$0xff] %v1073_v32  ;;  %870 = vst [vmem:[%s1362_s24 + $0x98] sm:$0xff] %v1089_v33  ;;  %v628_v34 = vpop.f32.mrb[3].mxu0  ;;  %v692_v35 = vpop.f32.mrb[3].mxu1 }
  0xfe   : > { %852 = vst [vmem:[%s1362_s24 + $0x8] sm:$0xff] %v628_v34  ;;  %868 = vst [vmem:[%s1362_s24 + $0x88] sm:$0xff] %v692_v35 }
 0x102   : > { %v1076_v36 = vpop.f32.mrb[4].mxu0  ;;  %v1092_v37 = vpop.f32.mrb[4].mxu1 }
 0x103   : > { %857 = vst [vmem:[%s1362_s24 + $0x30] sm:$0xff] %v1076_v36  ;;  %873 = vst [vmem:[%s1362_s24 + $0xb0] sm:$0xff] %v1092_v37  ;;  %v641_v38 = vpop.f32.mrb[5].mxu0  ;;  %v705_v39 = vpop.f32.mrb[5].mxu1 }
 0x104   : > { %855 = vst [vmem:[%s1362_s24 + $0x20] sm:$0xff] %v641_v38  ;;  %871 = vst [vmem:[%s1362_s24 + $0xa0] sm:$0xff] %v705_v39  ;;  %v1077_v40 = vpop.f32.mrb[6].mxu0  ;;  %v1093_v41 = vpop.f32.mrb[6].mxu1 }
 0x105   : > { %858 = vst [vmem:[%s1362_s24 + $0x38] sm:$0xff] %v1077_v40  ;;  %874 = vst [vmem:[%s1362_s24 + $0xb8] sm:$0xff] %v1093_v41  ;;  %v644_v42 = vpop.f32.mrb[7].mxu0  ;;  %v708_v43 = vpop.f32.mrb[7].mxu1 }
 0x106   : > { %856 = vst [vmem:[%s1362_s24 + $0x28] sm:$0xff] %v644_v42  ;;  %872 = vst [vmem:[%s1362_s24 + $0xa8] sm:$0xff] %v708_v43 }
 0x10a   : > { %v1080_v44 = vpop.f32.mrb[8].mxu0  ;;  %v1096_v45 = vpop.f32.mrb[8].mxu1 }
 0x10b   : > { %861 = vst [vmem:[%s1362_s24 + $0x50] sm:$0xff] %v1080_v44  ;;  %877 = vst [vmem:[%s1362_s24 + $0xd0] sm:$0xff] %v1096_v45  ;;  %v657_v46 = vpop.f32.mrb[9].mxu0  ;;  %v721_v47 = vpop.f32.mrb[9].mxu1 }
 0x10c   : > { %859 = vst [vmem:[%s1362_s24 + $0x40] sm:$0xff] %v657_v46  ;;  %875 = vst [vmem:[%s1362_s24 + $0xc0] sm:$0xff] %v721_v47  ;;  %v1081_v48 = vpop.f32.mrb[10].mxu0  ;;  %v1097_v49 = vpop.f32.mrb[10].mxu1 }
 0x10d   : > { %862 = vst [vmem:[%s1362_s24 + $0x58] sm:$0xff] %v1081_v48  ;;  %878 = vst [vmem:[%s1362_s24 + $0xd8] sm:$0xff] %v1097_v49  ;;  %v660_v50 = vpop.f32.mrb[11].mxu0  ;;  %v724_v51 = vpop.f32.mrb[11].mxu1 }
 0x10e   : > { %860 = vst [vmem:[%s1362_s24 + $0x48] sm:$0xff] %v660_v50  ;;  %876 = vst [vmem:[%s1362_s24 + $0xc8] sm:$0xff] %v724_v51 }
 0x112   : > { %v1084_v52 = vpop.f32.mrb[12].mxu0  ;;  %v1100_v53 = vpop.f32.mrb[12].mxu1 }
 0x113   : > { %865 = vst [vmem:[%s1362_s24 + $0x70] sm:$0xff] %v1084_v52  ;;  %881 = vst [vmem:[%s1362_s24 + $0xf0] sm:$0xff] %v1100_v53  ;;  %v673_v54 = vpop.f32.mrb[13].mxu0  ;;  %v737_v55 = vpop.f32.mrb[13].mxu1 }
 0x114   : > { %863 = vst [vmem:[%s1362_s24 + $0x60] sm:$0xff] %v673_v54  ;;  %879 = vst [vmem:[%s1362_s24 + $0xe0] sm:$0xff] %v737_v55  ;;  %v1085_v56 = vpop.f32.mrb[14].mxu0  ;;  %v1101_v57 = vpop.f32.mrb[14].mxu1 }
 0x115   : > { %866 = vst [vmem:[%s1362_s24 + $0x78] sm:$0xff] %v1085_v56  ;;  %882 = vst [vmem:[%s1362_s24 + $0xf8] sm:$0xff] %v1101_v57  ;;  %v676_v58 = vpop.f32.mrb[15].mxu0  ;;  %v740_v59 = vpop.f32.mrb[15].mxu1 }
 0x116   : > { %864 = vst [vmem:[%s1362_s24 + $0x68] sm:$0xff] %v676_v58  ;;  %880 = vst [vmem:[%s1362_s24 + $0xe8] sm:$0xff] %v740_v59 }
 0x117 PF: > { %s14_s17 = sadd.s32 1, %s1172_s17   ;;  %s1410_s15 = smov %s1168_s16 }
 0x118   : > { %p11_p5 = scmp.ge.s32.totalorder %s14_s17, 4   ;;  %s1411_s16 = smov %s1413_s18 }
 0x11a   :  { %13 = sbr.rel (!%p11_p5) target bundleno = 2 (0x2), region = 83 }

// kernel: forward.8
= control target key start
LH: loop header
LB: loop body
LE: loop exit
PB: predicated region body
PF: predicated region fallthrough
CT: control target
= control target key end

     0   :  { %s711_s1 = inlined_call_operand.vmem [shape: bf16[256,128], index: 1, kind: input, shape index: {}]   ;;  %s712_s0 = inlined_call_operand.vmem [shape: f32[128,256], index: 0, kind: input, shape index: {}]   ;;  %s713_s2 = inlined_call_operand.vmem [shape: f32[128,128], index: 2, kind: output, shape index: {}]  }
   0x1   :  { %v488_v0 = vld [vmem:[%s711_s1 + $0x40] sm:$0xff]   ;;  %v490_v2 = vld [vmem:[%s711_s1 + $0x48] sm:$0xff]   ;;  %v492_v4 = vld [vmem:[%s711_s1 + $0x50] sm:$0xff]  }
   0x2   :  { %v489_v1 = vld [vmem:[%s711_s1] sm:$0xff]   ;;  %408 = vmatprep.subr.bf16.mxu0 %v488_v0  ;;  %472 = vmatprep.subr.bf16.mxu1 %v488_v0  ;;  %v491_v3 = vld [vmem:[%s711_s1 + $0x8] sm:$0xff]   ;;  %v493_v5 = vld [vmem:[%s711_s1 + $0x10] sm:$0xff]  }
   0x3   :  { %409 = vmatpush3.bf16.msra.mxu0 %v489_v1  ;;  %480 = vmatpush3.bf16.msra.mxu1 %v489_v1  ;;  %v494_v6 = vld [vmem:[%s711_s1 + $0x58] sm:$0xff]   ;;  %v496_v8 = vld [vmem:[%s711_s1 + $0x60] sm:$0xff]   ;;  %v498_v10 = vld [vmem:[%s711_s1 + $0x68] sm:$0xff]  }
   0x4   :  { %410 = vmatprep.subr.bf16.mxu0 %v490_v2  ;;  %473 = vmatprep.subr.bf16.mxu1 %v490_v2  ;;  %v495_v7 = vld [vmem:[%s711_s1 + $0x18] sm:$0xff]   ;;  %v497_v9 = vld [vmem:[%s711_s1 + $0x20] sm:$0xff]   ;;  %v33_v11 = vld [vmem:[%s712_s0 + $0x8] sm:$0xff] }
   0x5   :  { %v35_v12 = vld [vmem:[%s712_s0 + $0x18] sm:$0xff]  ;;  %v49_v13 = vld [vmem:[%s712_s0 + $0x88] sm:$0xff]  ;;  %v500_v18 = vld [vmem:[%s711_s1 + $0x70] sm:$0xff]  }
   0x6   :  { %v81_v14 = vpack.c.bf16 %v35_v12, %v33_v11  ;;  %v51_v15 = vld [vmem:[%s712_s0 + $0x98] sm:$0xff]  ;;  %v499_v17 = vld [vmem:[%s711_s1 + $0x28] sm:$0xff]   ;;  %v501_v19 = vld [vmem:[%s711_s1 + $0x30] sm:$0xff]  }
   0x7   :  { %411 = vmatpush3.bf16.msra.mxu0 %v491_v3  ;;  %481 = vmatpush3.bf16.msra.mxu1 %v491_v3  ;;  %v89_v16 = vpack.c.bf16 %v51_v15, %v49_v13  ;;  %v502_v20 = vld [vmem:[%s711_s1 + $0x78] sm:$0xff]   ;;  %v32_v22 = vld [vmem:[%s712_s0] sm:$0xff]  ;;  %v34_v23 = vld [vmem:[%s712_s0 + $0x10] sm:$0xff] }
   0x8   :  { %412 = vmatprep.subr.bf16.mxu0 %v492_v4  ;;  %474 = vmatprep.subr.bf16.mxu1 %v492_v4  ;;  %v503_v21 = vld [vmem:[%s711_s1 + $0x38] sm:$0xff]   ;;  %v48_v24 = vld [vmem:[%s712_s0 + $0x80] sm:$0xff]  ;;  %v50_v25 = vld [vmem:[%s712_s0 + $0x90] sm:$0xff]  ;;  %v80_v30 = vpack.c.bf16 %v34_v23, %v32_v22 }
   0x9   :  { %256 = vmatprep.mubr.bf16.mxu0 %v81_v14  ;;  %288 = vmatprep.mubr.bf16.mxu1 %v89_v16  ;;  %v37_v26 = vld [vmem:[%s712_s0 + $0x28] sm:$0xff]  ;;  %v39_v27 = vld [vmem:[%s712_s0 + $0x38] sm:$0xff]  ;;  %v88_v31 = vpack.c.bf16 %v50_v25, %v48_v24  ;;  %v36_v34 = vld [vmem:[%s712_s0 + $0x20] sm:$0xff] }
   0xa   :  { %v53_v28 = vld [vmem:[%s712_s0 + $0xa8] sm:$0xff]  ;;  %v55_v29 = vld [vmem:[%s712_s0 + $0xb8] sm:$0xff]  ;;  %v83_v32 = vpack.c.bf16 %v39_v27, %v37_v26  ;;  %v38_v35 = vld [vmem:[%s712_s0 + $0x30] sm:$0xff] }
   0xb   :  { %413 = vmatpush3.bf16.msra.mxu0 %v493_v5  ;;  %482 = vmatpush3.bf16.msra.mxu1 %v493_v5  ;;  %v91_v33 = vpack.c.bf16 %v55_v29, %v53_v28  ;;  %v52_v36 = vld [vmem:[%s712_s0 + $0xa0] sm:$0xff]  ;;  %v54_v37 = vld [vmem:[%s712_s0 + $0xb0] sm:$0xff]  ;;  %v41_v38 = vld [vmem:[%s712_s0 + $0x48] sm:$0xff]  ;;  %v82_v42 = vpack.c.bf16 %v38_v35, %v36_v34 }
   0xc   :  { %414 = vmatprep.subr.bf16.mxu0 %v494_v6  ;;  %475 = vmatprep.subr.bf16.mxu1 %v494_v6  ;;  %v43_v39 = vld [vmem:[%s712_s0 + $0x58] sm:$0xff]  ;;  %v57_v40 = vld [vmem:[%s712_s0 + $0xc8] sm:$0xff]  ;;  %v90_v43 = vpack.c.bf16 %v54_v37, %v52_v36  ;;  %v40_v46 = vld [vmem:[%s712_s0 + $0x40] sm:$0xff] }
   0xd   :  { %v59_v41 = vld [vmem:[%s712_s0 + $0xd8] sm:$0xff]  ;;  %v85_v44 = vpack.c.bf16 %v43_v39, %v41_v38  ;;  %v42_v47 = vld [vmem:[%s712_s0 + $0x50] sm:$0xff]  ;;  %v56_v48 = vld [vmem:[%s712_s0 + $0xc0] sm:$0xff] }
   0xe   :  { %v93_v45 = vpack.c.bf16 %v59_v41, %v57_v40  ;;  %v58_v49 = vld [vmem:[%s712_s0 + $0xd0] sm:$0xff]  ;;  %v45_v50 = vld [vmem:[%s712_s0 + $0x68] sm:$0xff]  ;;  %v47_v51 = vld [vmem:[%s712_s0 + $0x78] sm:$0xff]  ;;  %v84_v54 = vpack.c.bf16 %v42_v47, %v40_v46 }
   0xf   :  { %415 = vmatpush3.bf16.msra.mxu0 %v495_v7  ;;  %483 = vmatpush3.bf16.msra.mxu1 %v495_v7  ;;  %v61_v52 = vld [vmem:[%s712_s0 + $0xe8] sm:$0xff]  ;;  %v63_v53 = vld [vmem:[%s712_s0 + $0xf8] sm:$0xff]  ;;  %v92_v55 = vpack.c.bf16 %v58_v49, %v56_v48  ;;  %v87_v56 = vpack.c.bf16 %v47_v51, %v45_v50  ;;  %v44_v58 = vld [vmem:[%s712_s0 + $0x60] sm:$0xff] }
  0x10   :  { %416 = vmatprep.subr.bf16.mxu0 %v496_v8  ;;  %476 = vmatprep.subr.bf16.mxu1 %v496_v8  ;;  %v95_v57 = vpack.c.bf16 %v63_v53, %v61_v52  ;;  %v46_v59 = vld [vmem:[%s712_s0 + $0x70] sm:$0xff]  ;;  %v60_v60 = vld [vmem:[%s712_s0 + $0xe0] sm:$0xff] }
  0x11   :  { %v62_v61 = vld [vmem:[%s712_s0 + $0xf0] sm:$0xff]  ;;  %v86_v62 = vpack.c.bf16 %v46_v59, %v44_v58 }
  0x12   :  { %v94_v63 = vpack.c.bf16 %v62_v61, %v60_v60 }
  0x13   :  { %417 = vmatpush3.bf16.msra.mxu0 %v497_v9  ;;  %484 = vmatpush3.bf16.msra.mxu1 %v497_v9 }
  0x14   :  { %418 = vmatprep.subr.bf16.mxu0 %v498_v10  ;;  %477 = vmatprep.subr.bf16.mxu1 %v498_v10 }
  0x17   :  { %419 = vmatpush3.bf16.msra.mxu0 %v499_v17  ;;  %485 = vmatpush3.bf16.msra.mxu1 %v499_v17 }
  0x18   :  { %420 = vmatprep.subr.bf16.mxu0 %v500_v18  ;;  %478 = vmatprep.subr.bf16.mxu1 %v500_v18 }
  0x1b   :  { %421 = vmatpush3.bf16.msra.mxu0 %v501_v19  ;;  %486 = vmatpush3.bf16.msra.mxu1 %v501_v19 }
  0x1c   :  { %422 = vmatprep.subr.bf16.mxu0 %v502_v20  ;;  %479 = vmatprep.subr.bf16.mxu1 %v502_v20 }
  0x1f   :  { %423 = vmatpush3.bf16.msra.mxu0 %v503_v21  ;;  %487 = vmatpush3.bf16.msra.mxu1 %v503_v21 }
  0x22   :  { %257 = vmatmul.mubr.bf16.vlgmr.msra.gmra.mrb[0].mxu0 %v80_v30  ;;  %289 = vmatmul.mubr.bf16.vlgmr.msra.gmra.mrb[0].mxu1 %v88_v31 }
  0x23   :  { %264 = vmatprep.mubr.bf16.mxu0 %v83_v32  ;;  %296 = vmatprep.mubr.bf16.mxu1 %v91_v33 }
  0x2a   :  { %265 = vmatmul.mubr.bf16.gmra.mrb[4].mxu0 %v82_v42  ;;  %297 = vmatmul.mubr.bf16.gmra.mrb[4].mxu1 %v90_v43 }
  0x2b   :  { %272 = vmatprep.mubr.bf16.mxu0 %v85_v44  ;;  %304 = vmatprep.mubr.bf16.mxu1 %v93_v45 }
  0x32   :  { %273 = vmatmul.mubr.bf16.gmra.mrb[8].mxu0 %v84_v54  ;;  %305 = vmatmul.mubr.bf16.gmra.mrb[8].mxu1 %v92_v55 }
  0x33   :  { %280 = vmatprep.mubr.bf16.mxu0 %v87_v56  ;;  %312 = vmatprep.mubr.bf16.mxu1 %v95_v57 }
  0x3a   :  { %281 = vmatmul.mubr.bf16.gmra.mrb[12].mxu0 %v86_v62  ;;  %313 = vmatmul.mubr.bf16.gmra.mrb[12].mxu1 %v94_v63 }
  0xf5   :  { %v424_v0 = vpop.f32.mrb[0].mxu0  ;;  %v448_v1 = vpop.f32.mrb[0].mxu1 }
  0xf6   :  { %v425_v2 = vpop.f32.mrb[1].mxu0  ;;  %v449_v3 = vpop.f32.mrb[1].mxu1 }
  0xf7   :  { %v426_v4 = vadd.f32 %v425_v2, %v424_v0  ;;  %v450_v5 = vadd.f32 %v449_v3, %v448_v1  ;;  %v427_v6 = vpop.f32.mrb[2].mxu0  ;;  %v451_v7 = vpop.f32.mrb[2].mxu1 }
  0xf8   :  { %v428_v8 = vpop.f32.mrb[3].mxu0  ;;  %v452_v9 = vpop.f32.mrb[3].mxu1 }
  0xf9   :  { %372 = vst [vmem:[%s713_s2] sm:$0xff] %v426_v4  ;;  %380 = vst [vmem:[%s713_s2 + $0x40] sm:$0xff] %v450_v5  ;;  %v429_v10 = vadd.f32 %v428_v8, %v427_v6  ;;  %v453_v11 = vadd.f32 %v452_v9, %v451_v7 }
  0xfb   :  { %373 = vst [vmem:[%s713_s2 + $0x8] sm:$0xff] %v429_v10  ;;  %381 = vst [vmem:[%s713_s2 + $0x48] sm:$0xff] %v453_v11 }
  0xfd   :  { %v430_v12 = vpop.f32.mrb[4].mxu0  ;;  %v454_v13 = vpop.f32.mrb[4].mxu1 }
  0xfe   :  { %v431_v14 = vpop.f32.mrb[5].mxu0  ;;  %v455_v15 = vpop.f32.mrb[5].mxu1 }
  0xff   :  { %v432_v16 = vadd.f32 %v431_v14, %v430_v12  ;;  %v456_v17 = vadd.f32 %v455_v15, %v454_v13  ;;  %v433_v18 = vpop.f32.mrb[6].mxu0  ;;  %v457_v19 = vpop.f32.mrb[6].mxu1 }
 0x100   :  { %v434_v20 = vpop.f32.mrb[7].mxu0  ;;  %v458_v21 = vpop.f32.mrb[7].mxu1 }
 0x101   :  { %374 = vst [vmem:[%s713_s2 + $0x10] sm:$0xff] %v432_v16  ;;  %382 = vst [vmem:[%s713_s2 + $0x50] sm:$0xff] %v456_v17  ;;  %v435_v22 = vadd.f32 %v434_v20, %v433_v18  ;;  %v459_v23 = vadd.f32 %v458_v21, %v457_v19 }
 0x103   :  { %375 = vst [vmem:[%s713_s2 + $0x18] sm:$0xff] %v435_v22  ;;  %383 = vst [vmem:[%s713_s2 + $0x58] sm:$0xff] %v459_v23 }
 0x105   :  { %v436_v24 = vpop.f32.mrb[8].mxu0  ;;  %v460_v25 = vpop.f32.mrb[8].mxu1 }
 0x106   :  { %v437_v26 = vpop.f32.mrb[9].mxu0  ;;  %v461_v27 = vpop.f32.mrb[9].mxu1 }
 0x107   :  { %v438_v28 = vadd.f32 %v437_v26, %v436_v24  ;;  %v462_v29 = vadd.f32 %v461_v27, %v460_v25  ;;  %v439_v30 = vpop.f32.mrb[10].mxu0  ;;  %v463_v31 = vpop.f32.mrb[10].mxu1 }
 0x108   :  { %v440_v32 = vpop.f32.mrb[11].mxu0  ;;  %v464_v33 = vpop.f32.mrb[11].mxu1 }
 0x109   :  { %376 = vst [vmem:[%s713_s2 + $0x20] sm:$0xff] %v438_v28  ;;  %384 = vst [vmem:[%s713_s2 + $0x60] sm:$0xff] %v462_v29  ;;  %v441_v34 = vadd.f32 %v440_v32, %v439_v30  ;;  %v465_v35 = vadd.f32 %v464_v33, %v463_v31 }
 0x10b   :  { %377 = vst [vmem:[%s713_s2 + $0x28] sm:$0xff] %v441_v34  ;;  %385 = vst [vmem:[%s713_s2 + $0x68] sm:$0xff] %v465_v35 }
 0x10d   :  { %v442_v36 = vpop.f32.mrb[12].mxu0  ;;  %v466_v37 = vpop.f32.mrb[12].mxu1 }
 0x10e   :  { %v443_v38 = vpop.f32.mrb[13].mxu0  ;;  %v467_v39 = vpop.f32.mrb[13].mxu1 }
 0x10f   :  { %v444_v40 = vadd.f32 %v443_v38, %v442_v36  ;;  %v468_v41 = vadd.f32 %v467_v39, %v466_v37  ;;  %v445_v42 = vpop.f32.mrb[14].mxu0  ;;  %v469_v43 = vpop.f32.mrb[14].mxu1 }
 0x110   :  { %v446_v44 = vpop.f32.mrb[15].mxu0  ;;  %v470_v45 = vpop.f32.mrb[15].mxu1 }
 0x111   :  { %378 = vst [vmem:[%s713_s2 + $0x30] sm:$0xff] %v444_v40  ;;  %386 = vst [vmem:[%s713_s2 + $0x70] sm:$0xff] %v468_v41  ;;  %v447_v46 = vadd.f32 %v446_v44, %v445_v42  ;;  %v471_v47 = vadd.f32 %v470_v45, %v469_v43 }
 0x113   :  { %379 = vst [vmem:[%s713_s2 + $0x38] sm:$0xff] %v447_v46  ;;  %387 = vst [vmem:[%s713_s2 + $0x78] sm:$0xff] %v471_v47 }

// kernel: forward.9
= control target key start
LH: loop header
LB: loop body
LE: loop exit
PB: predicated region body
PF: predicated region fallthrough
CT: control target
= control target key end

     0   :  { %s736_s0 = inlined_call_operand.vmem [shape: f32[128,128], index: 0, kind: input, shape index: {}]   ;;  %s737_s1 = inlined_call_operand.vmem [shape: bf16[128,128], index: 1, kind: input, shape index: {}]   ;;  %s738_s2 = inlined_call_operand.vmem [shape: f32[1,128], index: 2, kind: input, shape index: {}]   ;;  %s739_s3 = inlined_call_operand.vmem [shape: f32[1,128], index: 3, kind: input, shape index: {}]   ;;  %s740_s4 = inlined_call_operand.vmem [shape: f32[128,128], index: 4, kind: input, shape index: {}]   ;;  %s741_s5 = inlined_call_operand.hbm [shape: f32[128,128], index: 5, kind: output, shape index: {}]  }
   0x1   :  { %v497_v0 = vld [vmem:[%s737_s1] sm:$0xff]   ;;  %v498_v1 = vld [vmem:[%s737_s1 + $0x8] sm:$0xff]   ;;  %v499_v2 = vld [vmem:[%s737_s1 + $0x10] sm:$0xff]  }
   0x2   :  { %446 = vmatprep.subr.bf16.mxu0 %v497_v0  ;;  %478 = vmatprep.subr.bf16.mxu1 %v497_v0  ;;  %v500_v3 = vld [vmem:[%s737_s1 + $0x18] sm:$0xff]   ;;  %v42_v4 = vld [vmem:[%s736_s0] sm:$0xff]  ;;  %v43_v5 = vld [vmem:[%s736_s0 + $0x8] sm:$0xff] }
   0x3   :  { %447 = vmatpush3.bf16.msra.mxu0 %v497_v0  ;;  %486 = vmatpush3.bf16.msra.mxu1 %v497_v0  ;;  %v583_v6 = vld [vmem:[%s738_s2] ss:$0 sm:$0xff]  ;;  %v51_v11 = vld [vmem:[%s736_s0 + $0x48] sm:$0xff]  ;;  %v44_v21 = vld [vmem:[%s736_s0 + $0x10] sm:$0xff] }
   0x4   :  { %448 = vmatprep.subr.bf16.mxu0 %v498_v1  ;;  %479 = vmatprep.subr.bf16.mxu1 %v498_v1  ;;  %v65_v7 = vmul.f32 %v583_v6, %v42_v4  ;;  %v66_v8 = vmul.f32 %v583_v6, %v43_v5  ;;  %v590_v9 = vld [vmem:[%s739_s3] ss:$0 sm:$0xff]  ;;  %v74_v13 = vmul.f32 %v583_v6, %v51_v11  ;;  %v45_v22 = vld [vmem:[%s736_s0 + $0x18] sm:$0xff]  ;;  %v52_v25 = vld [vmem:[%s736_s0 + $0x50] sm:$0xff] }
   0x5   :  { %v50_v10 = vld [vmem:[%s736_s0 + $0x40] sm:$0xff]  ;;  %v53_v26 = vld [vmem:[%s736_s0 + $0x58] sm:$0xff] }
   0x6   :  { %v73_v12 = vmul.f32 %v583_v6, %v50_v10  ;;  %v88_v14 = vadd.f32 %v590_v9, %v65_v7  ;;  %v89_v15 = vadd.f32 %v590_v9, %v66_v8  ;;  %v501_v16 = vld [vmem:[%s737_s1 + $0x20] sm:$0xff]   ;;  %v97_v18 = vadd.f32 %v590_v9, %v74_v13 }
   0x7   :  { %449 = vmatpush3.bf16.msra.mxu0 %v498_v1  ;;  %487 = vmatpush3.bf16.msra.mxu1 %v498_v1 }
   0x8   :  { %450 = vmatprep.subr.bf16.mxu0 %v499_v2  ;;  %480 = vmatprep.subr.bf16.mxu1 %v499_v2  ;;  %v96_v17 = vadd.f32 %v590_v9, %v73_v12  ;;  %v104_v19 = vmax.f32 %v88_v14, 0.0  ;;  %v105_v20 = vmax.f32 %v89_v15, 0.0  ;;  %v113_v24 = vmax.f32 %v97_v18, 0.0 }
   0xa   :  { %v112_v23 = vmax.f32 %v96_v17, 0.0 }
   0xb   :  { %451 = vmatpush3.bf16.msra.mxu0 %v499_v2  ;;  %488 = vmatpush3.bf16.msra.mxu1 %v499_v2 }
   0xc   :  { %452 = vmatprep.subr.bf16.mxu0 %v500_v3  ;;  %481 = vmatprep.subr.bf16.mxu1 %v500_v3 }
   0xd   :  { %10 = vsyncpa [#allocation4], 0  ;;  %v502_v27 = vld [vmem:[%s737_s1 + $0x28] sm:$0xff]   ;;  %v136_v28 = vpack.c.bf16 %v105_v20, %v104_v19  ;;  %v46_v29 = vld [vmem:[%s736_s0 + $0x20] sm:$0xff]  ;;  %v140_v30 = vpack.c.bf16 %v113_v24, %v112_v23  ;;  %v67_v34 = vmul.f32 %v583_v6, %v44_v21  ;;  %v68_v35 = vmul.f32 %v583_v6, %v45_v22  ;;  %s529_s15 = smov [#allocation3]  }
   0xe   :  { %v47_v31 = vld [vmem:[%s736_s0 + $0x28] sm:$0xff]  ;;  %v54_v32 = vld [vmem:[%s736_s0 + $0x60] sm:$0xff]  ;;  %v75_v36 = vmul.f32 %v583_v6, %v52_v25  ;;  %v76_v37 = vmul.f32 %v583_v6, %v53_v26  ;;  %v69_v38 = vmul.f32 %v583_v6, %v46_v29  ;;  %v503_v42 = vld [vmem:[%s737_s1 + $0x30] sm:$0xff]  }
   0xf   :  { %453 = vmatpush3.bf16.msra.mxu0 %v500_v3  ;;  %489 = vmatpush3.bf16.msra.mxu1 %v500_v3  ;;  %v55_v33 = vld [vmem:[%s736_s0 + $0x68] sm:$0xff]  ;;  %v70_v39 = vmul.f32 %v583_v6, %v47_v31  ;;  %v77_v40 = vmul.f32 %v583_v6, %v54_v32  ;;  %v90_v43 = vadd.f32 %v590_v9, %v67_v34  ;;  %v48_v48 = vld [vmem:[%s736_s0 + $0x30] sm:$0xff]  ;;  %v49_v52 = vld [vmem:[%s736_s0 + $0x38] sm:$0xff] }
  0x10   :  { %454 = vmatprep.subr.bf16.mxu0 %v501_v16  ;;  %482 = vmatprep.subr.bf16.mxu1 %v501_v16  ;;  %v78_v41 = vmul.f32 %v583_v6, %v55_v33  ;;  %v91_v44 = vadd.f32 %v590_v9, %v68_v35  ;;  %v98_v45 = vadd.f32 %v590_v9, %v75_v36  ;;  %v56_v53 = vld [vmem:[%s736_s0 + $0x70] sm:$0xff]  ;;  %v57_v54 = vld [vmem:[%s736_s0 + $0x78] sm:$0xff]  ;;  %v356_v20 = vld [vmem:[%s740_s4] sm:$0xff]  ;;  %s409_s0 = sshll.u32 %s529_s15, 4  ;;  %s410_s0 = int_to_ptr.vmem [resolvable:$true] %s409_s0 }
  0x11   :  { %462 = vmatprep.mubr.bf16.mxu0 %v136_v28  ;;  %470 = vmatprep.mubr.bf16.mxu1 %v140_v30  ;;  %v99_v46 = vadd.f32 %v590_v9, %v76_v37  ;;  %v92_v47 = vadd.f32 %v590_v9, %v69_v38  ;;  %v93_v49 = vadd.f32 %v590_v9, %v70_v39  ;;  %v504_v55 = vld [vmem:[%s737_s1 + $0x38] sm:$0xff]   ;;  %v106_v56 = vmax.f32 %v90_v43, 0.0  ;;  %v366_v19 = vld [vmem:[%s740_s4 + $0x50] sm:$0xff]  ;;  %v364_v21 = vld [vmem:[%s740_s4 + $0x40] sm:$0xff]  ;;  %p510_p1 = scmp.lt.s32.totalorder %s410_s0, %s410_s0 }
  0x12   :  { %v100_v50 = vadd.f32 %v590_v9, %v77_v40  ;;  %v101_v51 = vadd.f32 %v590_v9, %v78_v41  ;;  %v107_v57 = vmax.f32 %v91_v44, 0.0  ;;  %v114_v58 = vmax.f32 %v98_v45, 0.0  ;;  %v359_v24 = vld [vmem:[%s740_s4 + $0x18] sm:$0xff]  ;;  %v357_v30 = vld [vmem:[%s740_s4 + $0x8] sm:$0xff]  ;;  %v370_v43 = vld [vmem:[%s740_s4 + $0x70] sm:$0xff] }
  0x13   :  { %455 = vmatpush3.bf16.msra.mxu0 %v501_v16  ;;  %490 = vmatpush3.bf16.msra.mxu1 %v501_v16  ;;  %v115_v59 = vmax.f32 %v99_v46, 0.0  ;;  %v71_v60 = vmul.f32 %v583_v6, %v48_v48  ;;  %v72_v61 = vmul.f32 %v583_v6, %v49_v52  ;;  %v79_v62 = vmul.f32 %v583_v6, %v56_v53  ;;  %v367_v25 = vld [vmem:[%s740_s4 + $0x58] sm:$0xff]  ;;  %v365_v31 = vld [vmem:[%s740_s4 + $0x48] sm:$0xff]  ;;  %v360_v44 = vld [vmem:[%s740_s4 + $0x20] sm:$0xff] }
  0x14   :  { %456 = vmatprep.subr.bf16.mxu0 %v502_v27  ;;  %483 = vmatprep.subr.bf16.mxu1 %v502_v27  ;;  %v80_v63 = vmul.f32 %v583_v6, %v57_v54  ;;  %v108_v0 = vmax.f32 %v92_v47, 0.0  ;;  %v109_v1 = vmax.f32 %v93_v49, 0.0  ;;  %v116_v2 = vmax.f32 %v100_v50, 0.0  ;;  %v368_v45 = vld [vmem:[%s740_s4 + $0x60] sm:$0xff]  ;;  %v363_v48 = vld [vmem:[%s740_s4 + $0x38] sm:$0xff]  ;;  %v361_v54 = vld [vmem:[%s740_s4 + $0x28] sm:$0xff] }
  0x15   :  { %v117_v3 = vmax.f32 %v101_v51, 0.0  ;;  %v137_v4 = vpack.c.bf16 %v107_v57, %v106_v56  ;;  %v141_v5 = vpack.c.bf16 %v115_v59, %v114_v58  ;;  %v94_v7 = vadd.f32 %v590_v9, %v71_v60  ;;  %v371_v49 = vld [vmem:[%s740_s4 + $0x78] sm:$0xff] }
  0x16   :  { %v95_v8 = vadd.f32 %v590_v9, %v72_v61  ;;  %v102_v10 = vadd.f32 %v590_v9, %v79_v62  ;;  %v103_v11 = vadd.f32 %v590_v9, %v80_v63  ;;  %v138_v6 = vpack.c.bf16 %v109_v1, %v108_v0  ;;  %v358_v9 = vld [vmem:[%s740_s4 + $0x10] sm:$0xff] }
  0x17   :  { %457 = vmatpush3.bf16.msra.mxu0 %v502_v27  ;;  %491 = vmatpush3.bf16.msra.mxu1 %v502_v27  ;;  %v142_v12 = vpack.c.bf16 %v117_v3, %v116_v2  ;;  %v110_v13 = vmax.f32 %v94_v7, 0.0 }
  0x18   :  { %458 = vmatprep.subr.bf16.mxu0 %v503_v42  ;;  %484 = vmatprep.subr.bf16.mxu1 %v503_v42  ;;  %v111_v14 = vmax.f32 %v95_v8, 0.0  ;;  %v118_v15 = vmax.f32 %v102_v10, 0.0  ;;  %v119_v16 = vmax.f32 %v103_v11, 0.0 }
  0x1a   :  { %v139_v17 = vpack.c.bf16 %v111_v14, %v110_v13  ;;  %v143_v18 = vpack.c.bf16 %v119_v16, %v118_v15 }
  0x1b   :  { %459 = vmatpush3.bf16.msra.mxu0 %v503_v42  ;;  %492 = vmatpush3.bf16.msra.mxu1 %v503_v42  ;;  %v362_v42 = vld [vmem:[%s740_s4 + $0x30] sm:$0xff] }
  0x1c   :  { %460 = vmatprep.subr.bf16.mxu0 %v504_v55  ;;  %485 = vmatprep.subr.bf16.mxu1 %v504_v55 }
  0x1f   :  { %461 = vmatpush3.bf16.msra.mxu0 %v504_v55  ;;  %493 = vmatpush3.bf16.msra.mxu1 %v504_v55  ;;  %v369_v55 = vld [vmem:[%s740_s4 + $0x68] sm:$0xff]  ;;  %s505_s4 = scalar_lea.vmem %s410_s0, 2048 }
  0x20   :  { %p506_p0 = scmp.ne.s32.totalorder %s410_s0, %s505_s4  ;;  %p511_p2 = scmp.lt.s32.totalorder %s505_s4, %s505_s4 }
  0x22   :  { %463 = vmatmul.mubr.bf16.vlgmr.msra.gmra.mrb[0].mxu0 %v137_v4  ;;  %471 = vmatmul.mubr.bf16.vlgmr.msra.gmra.mrb[0].mxu1 %v141_v5  ;;  %p512_p3 = por %p511_p2, %p510_p1 }
  0x23   :  { %466 = vmatprep.mubr.bf16.mxu0 %v138_v6  ;;  %474 = vmatprep.mubr.bf16.mxu1 %v142_v12 }
  0x24   :  { %p513_p4 = pnand %p512_p3, %p506_p0 }
  0x2a   :  { %467 = vmatmul.mubr.bf16.gmra.mrb[4].mxu0 %v139_v17  ;;  %475 = vmatmul.mubr.bf16.gmra.mrb[4].mxu1 %v143_v18 }
  0xf5   :  { %v464_v22 = vpop.f32.mrb[0].mxu0  ;;  %v472_v23 = vpop.f32.mrb[0].mxu1 }
  0xf6   :  { %v374_v26 = vadd.f32 %v464_v22, %v358_v9  ;;  %v382_v27 = vadd.f32 %v472_v23, %v366_v19  ;;  %v242_v28 = vpop.f32.mrb[1].mxu0  ;;  %v274_v29 = vpop.f32.mrb[1].mxu1 }
  0xf7   :  { %v372_v32 = vadd.f32 %v356_v20, %v242_v28  ;;  %v380_v33 = vadd.f32 %v364_v21, %v274_v29  ;;  %v465_v34 = vpop.f32.mrb[2].mxu0  ;;  %v473_v35 = vpop.f32.mrb[2].mxu1 }
  0xf8   :  { %390 = vst [vmem:[#allocation3 + $0x10] sm:$0xff] %v374_v26  ;;  %398 = vst [vmem:[#allocation3 + $0x50] sm:$0xff] %v382_v27  ;;  %v375_v36 = vadd.f32 %v465_v34, %v359_v24  ;;  %v383_v37 = vadd.f32 %v473_v35, %v367_v25  ;;  %v245_v38 = vpop.f32.mrb[3].mxu0  ;;  %v277_v39 = vpop.f32.mrb[3].mxu1 }
  0xf9   :  { %388 = vst [vmem:[#allocation3] sm:$0xff] %v372_v32  ;;  %396 = vst [vmem:[#allocation3 + $0x40] sm:$0xff] %v380_v33  ;;  %v373_v40 = vadd.f32 %v357_v30, %v245_v38  ;;  %v381_v41 = vadd.f32 %v365_v31, %v277_v39 }
  0xfa   :  { %391 = vst [vmem:[#allocation3 + $0x18] sm:$0xff] %v375_v36  ;;  %399 = vst [vmem:[#allocation3 + $0x58] sm:$0xff] %v383_v37 }
  0xfb   :  { %389 = vst [vmem:[#allocation3 + $0x8] sm:$0xff] %v373_v40  ;;  %397 = vst [vmem:[#allocation3 + $0x48] sm:$0xff] %v381_v41 }
  0xfd   :  { %v468_v46 = vpop.f32.mrb[4].mxu0  ;;  %v476_v47 = vpop.f32.mrb[4].mxu1 }
  0xfe   :  { %v378_v50 = vadd.f32 %v468_v46, %v362_v42  ;;  %v386_v51 = vadd.f32 %v476_v47, %v370_v43  ;;  %v258_v52 = vpop.f32.mrb[5].mxu0  ;;  %v290_v53 = vpop.f32.mrb[5].mxu1 }
  0xff   :  { %v376_v56 = vadd.f32 %v360_v44, %v258_v52  ;;  %v384_v57 = vadd.f32 %v368_v45, %v290_v53  ;;  %v469_v58 = vpop.f32.mrb[6].mxu0  ;;  %v477_v59 = vpop.f32.mrb[6].mxu1 }
 0x100   :  { %394 = vst [vmem:[#allocation3 + $0x30] sm:$0xff] %v378_v50  ;;  %402 = vst [vmem:[#allocation3 + $0x70] sm:$0xff] %v386_v51  ;;  %v379_v60 = vadd.f32 %v469_v58, %v363_v48  ;;  %v387_v61 = vadd.f32 %v477_v59, %v371_v49  ;;  %v261_v62 = vpop.f32.mrb[7].mxu0  ;;  %v293_v63 = vpop.f32.mrb[7].mxu1 }
 0x101   :  { %392 = vst [vmem:[#allocation3 + $0x20] sm:$0xff] %v376_v56  ;;  %400 = vst [vmem:[#allocation3 + $0x60] sm:$0xff] %v384_v57  ;;  %v377_v0 = vadd.f32 %v361_v54, %v261_v62  ;;  %v385_v1 = vadd.f32 %v369_v55, %v293_v63 }
 0x102   :  { %395 = vst [vmem:[#allocation3 + $0x38] sm:$0xff] %v379_v60  ;;  %403 = vst [vmem:[#allocation3 + $0x78] sm:$0xff] %v387_v61 }
 0x103   :  { %393 = vst [vmem:[#allocation3 + $0x28] sm:$0xff] %v377_v0  ;;  %401 = vst [vmem:[#allocation3 + $0x68] sm:$0xff] %v385_v1 }
 0x104   :  { %516 = shalt.err (!%p513_p4)
}
 0x105   :  { %s517_s21 = scalar_lea.hbm %s741_s5, 2048 }
 0x106   :  { %p518_p5 = scmp.ne.s32.totalorder %s741_s5, %s517_s21  ;;  %p521_p6 = scmp.lt.u32.totalorder %s517_s21, %s741_s5 }
 0x108   :  { %p523_p7 = pnand %p521_p6, %p518_p5 }
 0x10a   :  { %526 = shalt.err (!%p523_p7)
}
 0x10b   :  { %s530_s26 = smov 128   ;;  %s531_s27 = smov 8  }
 0x10c   :  { %415 = dma.vmem_to_hbm [thread:$0]  %s410_s0, 2048, %s741_s5, [#allocation4], %s530_s26, %s530_s26, %s531_s27  }
 0x10d   :  { %527 = dma.done.wait [#allocation4], 2048  }
 0x10e   :  { %528 = vsyncadd [#allocation4], 4294965248 }
 0x10f   :  { %419 = vsyncpa [#allocation4], 1 }

// kernel: forward.5
= control target key start
LH: loop header
LB: loop body
LE: loop exit
PB: predicated region body
PF: predicated region fallthrough
CT: control target
= control target key end

     0   :  { %s641_s1 = inlined_call_operand.vmem [shape: bf16[128,128], index: 1, kind: input, shape index: {}]   ;;  %s642_s0 = inlined_call_operand.vmem [shape: f32[128,128], index: 0, kind: input, shape index: {}]   ;;  %s643_s2 = inlined_call_operand.vmem [shape: f32[1,128], index: 2, kind: input, shape index: {}]   ;;  %s644_s3 = inlined_call_operand.vmem [shape: f32[1,128], index: 3, kind: input, shape index: {}]   ;;  %s645_s4 = inlined_call_operand.vmem [shape: f32[128,128], index: 4, kind: output, shape index: {}]  }
   0x1   :  { %v446_v0 = vld [vmem:[%s641_s1] sm:$0xff]   ;;  %v447_v1 = vld [vmem:[%s641_s1 + $0x8] sm:$0xff]   ;;  %v448_v2 = vld [vmem:[%s641_s1 + $0x10] sm:$0xff]  }
   0x2   :  { %398 = vmatprep.subr.bf16.mxu0 %v446_v0  ;;  %430 = vmatprep.subr.bf16.mxu1 %v446_v0  ;;  %v449_v3 = vld [vmem:[%s641_s1 + $0x18] sm:$0xff]   ;;  %v38_v4 = vld [vmem:[%s642_s0] sm:$0xff]  ;;  %v39_v5 = vld [vmem:[%s642_s0 + $0x8] sm:$0xff] }
   0x3   :  { %399 = vmatpush3.bf16.msra.mxu0 %v446_v0  ;;  %438 = vmatpush3.bf16.msra.mxu1 %v446_v0  ;;  %v500_v6 = vld [vmem:[%s643_s2] ss:$0 sm:$0xff]  ;;  %v47_v11 = vld [vmem:[%s642_s0 + $0x48] sm:$0xff]  ;;  %v40_v21 = vld [vmem:[%s642_s0 + $0x10] sm:$0xff] }
   0x4   :  { %400 = vmatprep.subr.bf16.mxu0 %v447_v1  ;;  %431 = vmatprep.subr.bf16.mxu1 %v447_v1  ;;  %v61_v7 = vmul.f32 %v500_v6, %v38_v4  ;;  %v62_v8 = vmul.f32 %v500_v6, %v39_v5  ;;  %v507_v9 = vld [vmem:[%s644_s3] ss:$0 sm:$0xff]  ;;  %v70_v13 = vmul.f32 %v500_v6, %v47_v11  ;;  %v41_v24 = vld [vmem:[%s642_s0 + $0x18] sm:$0xff]  ;;  %v48_v25 = vld [vmem:[%s642_s0 + $0x50] sm:$0xff] }
   0x5   :  { %v46_v10 = vld [vmem:[%s642_s0 + $0x40] sm:$0xff]  ;;  %v49_v26 = vld [vmem:[%s642_s0 + $0x58] sm:$0xff]  ;;  %v451_v27 = vld [vmem:[%s641_s1 + $0x28] sm:$0xff]   ;;  %v63_v34 = vmul.f32 %v500_v6, %v40_v21  ;;  %v64_v35 = vmul.f32 %v500_v6, %v41_v24  ;;  %v71_v36 = vmul.f32 %v500_v6, %v48_v25 }
   0x6   :  { %v69_v12 = vmul.f32 %v500_v6, %v46_v10  ;;  %v84_v14 = vadd.f32 %v507_v9, %v61_v7  ;;  %v85_v15 = vadd.f32 %v507_v9, %v62_v8  ;;  %v450_v16 = vld [vmem:[%s641_s1 + $0x20] sm:$0xff]   ;;  %v93_v18 = vadd.f32 %v507_v9, %v70_v13  ;;  %v43_v31 = vld [vmem:[%s642_s0 + $0x28] sm:$0xff]  ;;  %v452_v42 = vld [vmem:[%s641_s1 + $0x30] sm:$0xff]  }
   0x7   :  { %401 = vmatpush3.bf16.msra.mxu0 %v447_v1  ;;  %439 = vmatpush3.bf16.msra.mxu1 %v447_v1  ;;  %v42_v29 = vld [vmem:[%s642_s0 + $0x20] sm:$0xff]  ;;  %v51_v33 = vld [vmem:[%s642_s0 + $0x68] sm:$0xff]  ;;  %v72_v37 = vmul.f32 %v500_v6, %v49_v26  ;;  %v66_v39 = vmul.f32 %v500_v6, %v43_v31  ;;  %v86_v43 = vadd.f32 %v507_v9, %v63_v34  ;;  %v44_v48 = vld [vmem:[%s642_s0 + $0x30] sm:$0xff] }
   0x8   :  { %402 = vmatprep.subr.bf16.mxu0 %v448_v2  ;;  %432 = vmatprep.subr.bf16.mxu1 %v448_v2  ;;  %v92_v17 = vadd.f32 %v507_v9, %v69_v12  ;;  %v100_v19 = vmax.f32 %v84_v14, 0.0  ;;  %v101_v20 = vmax.f32 %v85_v15, 0.0  ;;  %v109_v23 = vmax.f32 %v93_v18, 0.0  ;;  %v50_v32 = vld [vmem:[%s642_s0 + $0x60] sm:$0xff]  ;;  %v45_v52 = vld [vmem:[%s642_s0 + $0x38] sm:$0xff]  ;;  %v52_v53 = vld [vmem:[%s642_s0 + $0x70] sm:$0xff] }
   0x9   :  { %v65_v38 = vmul.f32 %v500_v6, %v42_v29  ;;  %v73_v40 = vmul.f32 %v500_v6, %v50_v32  ;;  %v74_v41 = vmul.f32 %v500_v6, %v51_v33  ;;  %v87_v44 = vadd.f32 %v507_v9, %v64_v35  ;;  %v53_v54 = vld [vmem:[%s642_s0 + $0x78] sm:$0xff] }
   0xa   :  { %v108_v22 = vmax.f32 %v92_v17, 0.0  ;;  %v132_v28 = vpack.c.bf16 %v101_v20, %v100_v19  ;;  %v94_v45 = vadd.f32 %v507_v9, %v71_v36  ;;  %v95_v46 = vadd.f32 %v507_v9, %v72_v37  ;;  %v453_v55 = vld [vmem:[%s641_s1 + $0x38] sm:$0xff]  }
   0xb   :  { %403 = vmatpush3.bf16.msra.mxu0 %v448_v2  ;;  %440 = vmatpush3.bf16.msra.mxu1 %v448_v2  ;;  %v88_v47 = vadd.f32 %v507_v9, %v65_v38  ;;  %v89_v49 = vadd.f32 %v507_v9, %v66_v39  ;;  %v96_v50 = vadd.f32 %v507_v9, %v73_v40  ;;  %v102_v56 = vmax.f32 %v86_v43, 0.0 }
   0xc   :  { %404 = vmatprep.subr.bf16.mxu0 %v449_v3  ;;  %433 = vmatprep.subr.bf16.mxu1 %v449_v3  ;;  %v136_v30 = vpack.c.bf16 %v109_v23, %v108_v22  ;;  %v97_v51 = vadd.f32 %v507_v9, %v74_v41  ;;  %v103_v57 = vmax.f32 %v87_v44, 0.0  ;;  %v110_v58 = vmax.f32 %v94_v45, 0.0 }
   0xd   :  { %414 = vmatprep.mubr.bf16.mxu0 %v132_v28  ;;  %v111_v59 = vmax.f32 %v95_v46, 0.0  ;;  %v67_v60 = vmul.f32 %v500_v6, %v44_v48  ;;  %v68_v61 = vmul.f32 %v500_v6, %v45_v52  ;;  %v75_v62 = vmul.f32 %v500_v6, %v52_v53 }
   0xe   :  { %422 = vmatprep.mubr.bf16.mxu1 %v136_v30  ;;  %v76_v63 = vmul.f32 %v500_v6, %v53_v54  ;;  %v104_v0 = vmax.f32 %v88_v47, 0.0  ;;  %v105_v1 = vmax.f32 %v89_v49, 0.0  ;;  %v112_v2 = vmax.f32 %v96_v50, 0.0 }
   0xf   :  { %405 = vmatpush3.bf16.msra.mxu0 %v449_v3  ;;  %441 = vmatpush3.bf16.msra.mxu1 %v449_v3  ;;  %v113_v3 = vmax.f32 %v97_v51, 0.0  ;;  %v133_v4 = vpack.c.bf16 %v103_v57, %v102_v56  ;;  %v137_v5 = vpack.c.bf16 %v111_v59, %v110_v58  ;;  %v90_v7 = vadd.f32 %v507_v9, %v67_v60 }
  0x10   :  { %406 = vmatprep.subr.bf16.mxu0 %v450_v16  ;;  %434 = vmatprep.subr.bf16.mxu1 %v450_v16  ;;  %v91_v8 = vadd.f32 %v507_v9, %v68_v61  ;;  %v98_v10 = vadd.f32 %v507_v9, %v75_v62  ;;  %v99_v11 = vadd.f32 %v507_v9, %v76_v63 }
  0x11   :  { %v134_v6 = vpack.c.bf16 %v105_v1, %v104_v0  ;;  %v138_v12 = vpack.c.bf16 %v113_v3, %v112_v2  ;;  %v106_v13 = vmax.f32 %v90_v7, 0.0 }
  0x12   :  { %v107_v14 = vmax.f32 %v91_v8, 0.0  ;;  %v114_v15 = vmax.f32 %v98_v10, 0.0 }
  0x13   :  { %407 = vmatpush3.bf16.msra.mxu0 %v450_v16  ;;  %442 = vmatpush3.bf16.msra.mxu1 %v450_v16  ;;  %v115_v16 = vmax.f32 %v99_v11, 0.0 }
  0x14   :  { %408 = vmatprep.subr.bf16.mxu0 %v451_v27  ;;  %435 = vmatprep.subr.bf16.mxu1 %v451_v27  ;;  %v135_v17 = vpack.c.bf16 %v107_v14, %v106_v13 }
  0x15   :  { %v139_v18 = vpack.c.bf16 %v115_v16, %v114_v15 }
  0x17   :  { %409 = vmatpush3.bf16.msra.mxu0 %v451_v27  ;;  %443 = vmatpush3.bf16.msra.mxu1 %v451_v27 }
  0x18   :  { %410 = vmatprep.subr.bf16.mxu0 %v452_v42  ;;  %436 = vmatprep.subr.bf16.mxu1 %v452_v42 }
  0x1b   :  { %411 = vmatpush3.bf16.msra.mxu0 %v452_v42  ;;  %444 = vmatpush3.bf16.msra.mxu1 %v452_v42 }
  0x1c   :  { %412 = vmatprep.subr.bf16.mxu0 %v453_v55  ;;  %437 = vmatprep.subr.bf16.mxu1 %v453_v55 }
  0x1f   :  { %413 = vmatpush3.bf16.msra.mxu0 %v453_v55  ;;  %445 = vmatpush3.bf16.msra.mxu1 %v453_v55 }
  0x22   :  { %415 = vmatmul.mubr.bf16.vlgmr.msra.gmra.mrb[0].mxu0 %v133_v4  ;;  %423 = vmatmul.mubr.bf16.vlgmr.msra.gmra.mrb[0].mxu1 %v137_v5 }
  0x23   :  { %418 = vmatprep.mubr.bf16.mxu0 %v134_v6  ;;  %426 = vmatprep.mubr.bf16.mxu1 %v138_v12 }
  0x2a   :  { %419 = vmatmul.mubr.bf16.gmra.mrb[4].mxu0 %v135_v17  ;;  %427 = vmatmul.mubr.bf16.gmra.mrb[4].mxu1 %v139_v18 }
  0xf5   :  { %v416_v19 = vpop.f32.mrb[0].mxu0  ;;  %v424_v20 = vpop.f32.mrb[0].mxu1 }
  0xf6   :  { %354 = vst [vmem:[%s645_s4 + $0x10] sm:$0xff] %v416_v19  ;;  %362 = vst [vmem:[%s645_s4 + $0x50] sm:$0xff] %v424_v20  ;;  %v238_v9 = vpop.f32.mrb[1].mxu0  ;;  %v270_v21 = vpop.f32.mrb[1].mxu1 }
  0xf7   :  { %352 = vst [vmem:[%s645_s4] sm:$0xff] %v238_v9  ;;  %360 = vst [vmem:[%s645_s4 + $0x40] sm:$0xff] %v270_v21  ;;  %v417_v22 = vpop.f32.mrb[2].mxu0  ;;  %v425_v23 = vpop.f32.mrb[2].mxu1 }
  0xf8   :  { %355 = vst [vmem:[%s645_s4 + $0x18] sm:$0xff] %v417_v22  ;;  %363 = vst [vmem:[%s645_s4 + $0x58] sm:$0xff] %v425_v23  ;;  %v241_v24 = vpop.f32.mrb[3].mxu0  ;;  %v273_v25 = vpop.f32.mrb[3].mxu1 }
  0xf9   :  { %353 = vst [vmem:[%s645_s4 + $0x8] sm:$0xff] %v241_v24  ;;  %361 = vst [vmem:[%s645_s4 + $0x48] sm:$0xff] %v273_v25 }
  0xfd   :  { %v420_v26 = vpop.f32.mrb[4].mxu0  ;;  %v428_v27 = vpop.f32.mrb[4].mxu1 }
  0xfe   :  { %358 = vst [vmem:[%s645_s4 + $0x30] sm:$0xff] %v420_v26  ;;  %366 = vst [vmem:[%s645_s4 + $0x70] sm:$0xff] %v428_v27  ;;  %v254_v28 = vpop.f32.mrb[5].mxu0  ;;  %v286_v29 = vpop.f32.mrb[5].mxu1 }
  0xff   :  { %356 = vst [vmem:[%s645_s4 + $0x20] sm:$0xff] %v254_v28  ;;  %364 = vst [vmem:[%s645_s4 + $0x60] sm:$0xff] %v286_v29  ;;  %v421_v30 = vpop.f32.mrb[6].mxu0  ;;  %v429_v31 = vpop.f32.mrb[6].mxu1 }
 0x100   :  { %359 = vst [vmem:[%s645_s4 + $0x38] sm:$0xff] %v421_v30  ;;  %367 = vst [vmem:[%s645_s4 + $0x78] sm:$0xff] %v429_v31  ;;  %v257_v32 = vpop.f32.mrb[7].mxu0  ;;  %v289_v33 = vpop.f32.mrb[7].mxu1 }
 0x101   :  { %357 = vst [vmem:[%s645_s4 + $0x28] sm:$0xff] %v257_v32  ;;  %365 = vst [vmem:[%s645_s4 + $0x68] sm:$0xff] %v289_v33 }

</bundles_post_ra>
